<compile_context>
chip_gen: v7x
topology: tpu7x:2x2x1
jax: 0.10.0
libtpu: 0.0.40
codegen_flags: <defaults>
</compile_context>

<pallas_src>
import jax
import jax.numpy as jnp
from jax.experimental import pallas as pl
from jax.experimental.pallas import tpu as pltpu

LANE = 128  # TPU lane width; class dim is padded to a multiple of this.


def _mlp_kernel(x_ref, w1_ref, b1_ref, w2_ref, b2_ref, w3_ref, b3_ref, o_ref):
    # Layer 1: Linear + ReLU (bf16 MXU matmul, f32 accumulate / elementwise).
    h1 = jnp.dot(x_ref[...], w1_ref[...], preferred_element_type=jnp.float32)
    h1 = jnp.maximum(h1 + b1_ref[...], 0.0)
    # Dropout(0.5) -> identity in eval mode.

    # Layer 2: Linear + ReLU.
    h2 = jnp.dot(h1.astype(w2_ref.dtype), w2_ref[...],
                 preferred_element_type=jnp.float32)
    h2 = jnp.maximum(h2 + b2_ref[...], 0.0)
    # Dropout(0.4) -> identity in eval mode.

    # Layer 3: Linear (class dim padded to 128 -> lane-dense unmasked stores).
    out = jnp.dot(h2.astype(w3_ref.dtype), w3_ref[...],
                  preferred_element_type=jnp.float32)
    o_ref[...] = (out + b3_ref[...]).astype(o_ref.dtype)


def improved_classifier_forward(x, params, *, tm=256):
    """x: [B, input_features] f32 -> logits [B, num_classes] f32."""
    w1, b1, w2, b2, w3, b3 = params
    B, F_in = x.shape
    F1 = w1.shape[1]
    F2 = w2.shape[1]
    num_classes = w3.shape[1]

    # --- pad class dim to a lane-dense multiple of 128 (zero cols are inert).
    ncls_pad = pl.cdiv(num_classes, LANE) * LANE
    w3p = jnp.zeros((F2, ncls_pad), w3.dtype).at[:, :num_classes].set(w3)
    b3p = jnp.zeros((1, ncls_pad), b3.dtype).at[:, :num_classes].set(b3)

    # --- batch tiling: TM rows per grid step (multiple of 8); pad B up.
    tm_eff = min(tm, max(8, pl.cdiv(B, 8) * 8))
    b_pad = pl.cdiv(B, tm_eff) * tm_eff
    if b_pad != B:
        x = jnp.pad(x, ((0, b_pad - B), (0, 0)))
    grid = (b_pad // tm_eff,)

    # --- bf16 matmul operands; biases and accumulation stay f32.
    x_bf = x.astype(jnp.bfloat16)
    w1_bf = w1.astype(jnp.bfloat16)
    w2_bf = w2.astype(jnp.bfloat16)
    w3_bf = w3p.astype(jnp.bfloat16)

    cost = pl.CostEstimate(
        flops=2 * b_pad * (F_in * F1 + F1 * F2 + F2 * ncls_pad),
        transcendentals=0,
        bytes_accessed=(x_bf.size * 2 + w1_bf.size * 2 + w2_bf.size * 2
                        + w3_bf.size * 2 + b1.size * 4 + b2.size * 4
                        + b3p.size * 4 + b_pad * ncls_pad * 4),
    )

    def const_spec(shape):  # weights/biases: same block every grid step -> resident
        return pl.BlockSpec(shape, lambda i: (0, 0))

    out_pad = pl.pallas_call(
        _mlp_kernel,
        out_shape=jax.ShapeDtypeStruct((b_pad, ncls_pad), jnp.float32),
        grid=grid,
        in_specs=[
            pl.BlockSpec((tm_eff, F_in), lambda i: (i, 0)),   # x: batch-tiled
            const_spec(w1_bf.shape), const_spec(b1.shape),
            const_spec(w2_bf.shape), const_spec(b2.shape),
            const_spec(w3_bf.shape), const_spec(b3p.shape),
        ],
        out_specs=pl.BlockSpec((tm_eff, ncls_pad), lambda i: (i, 0)),
        compiler_params=pltpu.CompilerParams(
            dimension_semantics=("parallel",),   # megacore sharding on v7x
            vmem_limit_bytes=16 << 20,           # actual footprint ~2 MiB
        ),
        cost_estimate=cost,
    )(x_bf, w1_bf, b1, w2_bf, b2, w3_bf, b3p)

    return out_pad[:B, :num_classes]


def init_params(key, input_features, num_classes):
    """Deterministic synthetic params (PyTorch Linear init, [in, out] layout)."""
    k1, k2, k3, k4, k5, k6 = jax.random.split(key, 6)

    def linear(kw, kb, fan_in, fan_out):
        bound = 1.0 / jnp.sqrt(fan_in)
        w = jax.random.uniform(kw, (fan_in, fan_out), jnp.float32, -bound, bound)
        b = jax.random.uniform(kb, (1, fan_out), jnp.float32, -bound, bound)
        return w, b

    w1, b1 = linear(k1, k2, input_features, 1024)
    w2, b2 = linear(k3, k4, 1024, 512)
    w3, b3 = linear(k5, k6, 512, num_classes)
    return (w1, b1, w2, b2, w3, b3)


if __name__ == "__main__":
    input_features = 32
    num_classes = 10
    batch = 8

    key = jax.random.PRNGKey(0)
    kx, kp = jax.random.split(key)
    x = jax.random.normal(kx, (batch, input_features), jnp.float32)
    params = init_params(kp, input_features, num_classes)

    logits = improved_classifier_forward(x, params)
    jax.block_until_ready(logits)
    assert logits.shape == (batch, num_classes)

    # Reference in plain JAX with the same bf16 operand rounding, f32 math.
    w1, b1, w2, b2, w3, b3 = params
    f32 = lambda a: a.astype(jnp.bfloat16).astype(jnp.float32)
    h1 = jnp.maximum(f32(x) @ f32(w1) + b1, 0.0)
    h2 = jnp.maximum(f32(h1) @ f32(w2) + b2, 0.0)
    ref = f32(h2) @ f32(w3) + b3
    assert jnp.allclose(logits, ref, atol=2e-2, rtol=2e-2)

    print("KERNEL_OK")
</pallas_src>

<mosaic_0001>
module attributes {stable_mosaic.version = 11 : i64} {
  func.func @_mlp_kernel(%arg0: i32, %arg1: memref<8x32xbf16, #tpu.memory_space<vmem>>, %arg2: memref<32x1024xbf16, #tpu.memory_space<vmem>>, %arg3: memref<1x1024xf32, #tpu.memory_space<vmem>>, %arg4: memref<1024x512xbf16, #tpu.memory_space<vmem>>, %arg5: memref<1x512xf32, #tpu.memory_space<vmem>>, %arg6: memref<512x128xbf16, #tpu.memory_space<vmem>>, %arg7: memref<1x128xf32, #tpu.memory_space<vmem>>, %arg8: memref<8x128xf32, #tpu.memory_space<vmem>>) attributes {dimension_semantics = [#tpu.dimension_semantics<parallel>], iteration_bounds = array<i64: 1>, scalar_prefetch = 0 : i64, scratch_operands = 0 : i64, tpu.core_type = #tpu.core_type<tc>, window_params = [{transform_indices = @transform_0, window_bounds = array<i64: 8, 32>}, {pipeline_mode = #tpu.pipeline_mode<synchronous>, transform_indices = @transform_1, window_bounds = array<i64: 32, 1024>}, {pipeline_mode = #tpu.pipeline_mode<synchronous>, transform_indices = @transform_2, window_bounds = array<i64: 1, 1024>}, {pipeline_mode = #tpu.pipeline_mode<synchronous>, transform_indices = @transform_3, window_bounds = array<i64: 1024, 512>}, {pipeline_mode = #tpu.pipeline_mode<synchronous>, transform_indices = @transform_4, window_bounds = array<i64: 1, 512>}, {pipeline_mode = #tpu.pipeline_mode<synchronous>, transform_indices = @transform_5, window_bounds = array<i64: 512, 128>}, {pipeline_mode = #tpu.pipeline_mode<synchronous>, transform_indices = @transform_6, window_bounds = array<i64: 1, 128>}, {transform_indices = @transform_7, window_bounds = array<i64: 8, 128>}]} {
    %c0 = arith.constant 0 : index
    %c0_0 = arith.constant 0 : index
    %0 = vector.load %arg1[%c0, %c0_0] : memref<8x32xbf16, #tpu.memory_space<vmem>>, vector<8x32xbf16>
    %c0_1 = arith.constant 0 : index
    %c0_2 = arith.constant 0 : index
    %1 = vector.load %arg2[%c0_1, %c0_2] : memref<32x1024xbf16, #tpu.memory_space<vmem>>, vector<32x1024xbf16>
    %cst = arith.constant dense<0.000000e+00> : vector<8x1024xf32>
    %2 = tpu.matmul %0, %1, %cst {dimension_numbers = #tpu.dot_dimension_numbers<[1], [0], [0], [1], [0, 0, 1, 1], [], []>} : vector<8x32xbf16>, vector<32x1024xbf16>, vector<8x1024xf32> -> vector<8x1024xf32>
    %c0_3 = arith.constant 0 : index
    %c0_4 = arith.constant 0 : index
    %3 = vector.load %arg3[%c0_3, %c0_4] : memref<1x1024xf32, #tpu.memory_space<vmem>>, vector<1x1024xf32>
    %4 = vector.broadcast %3 : vector<1x1024xf32> to vector<8x1024xf32>
    %5 = arith.addf %2, %4 : vector<8x1024xf32>
    %cst_5 = arith.constant 0.000000e+00 : f32
    %6 = vector.broadcast %cst_5 : f32 to vector<8x1024xf32>
    %7 = arith.maximumf %5, %6 : vector<8x1024xf32>
    %8 = arith.truncf %7 : vector<8x1024xf32> to vector<8x1024xbf16>
    %c0_6 = arith.constant 0 : index
    %c0_7 = arith.constant 0 : index
    %9 = vector.load %arg4[%c0_6, %c0_7] : memref<1024x512xbf16, #tpu.memory_space<vmem>>, vector<1024x512xbf16>
    %cst_8 = arith.constant dense<0.000000e+00> : vector<8x512xf32>
    %10 = tpu.matmul %8, %9, %cst_8 {dimension_numbers = #tpu.dot_dimension_numbers<[1], [0], [0], [1], [0, 0, 1, 1], [], []>} : vector<8x1024xbf16>, vector<1024x512xbf16>, vector<8x512xf32> -> vector<8x512xf32>
    %c0_9 = arith.constant 0 : index
    %c0_10 = arith.constant 0 : index
    %11 = vector.load %arg5[%c0_9, %c0_10] : memref<1x512xf32, #tpu.memory_space<vmem>>, vector<1x512xf32>
    %12 = vector.broadcast %11 : vector<1x512xf32> to vector<8x512xf32>
    %13 = arith.addf %10, %12 : vector<8x512xf32>
    %cst_11 = arith.constant 0.000000e+00 : f32
    %14 = vector.broadcast %cst_11 : f32 to vector<8x512xf32>
    %15 = arith.maximumf %13, %14 : vector<8x512xf32>
    %16 = arith.truncf %15 : vector<8x512xf32> to vector<8x512xbf16>
    %c0_12 = arith.constant 0 : index
    %c0_13 = arith.constant 0 : index
    %17 = vector.load %arg6[%c0_12, %c0_13] : memref<512x128xbf16, #tpu.memory_space<vmem>>, vector<512x128xbf16>
    %cst_14 = arith.constant dense<0.000000e+00> : vector<8x128xf32>
    %18 = tpu.matmul %16, %17, %cst_14 {dimension_numbers = #tpu.dot_dimension_numbers<[1], [0], [0], [1], [0, 0, 1, 1], [], []>} : vector<8x512xbf16>, vector<512x128xbf16>, vector<8x128xf32> -> vector<8x128xf32>
    %c0_15 = arith.constant 0 : index
    %c0_16 = arith.constant 0 : index
    %19 = vector.load %arg7[%c0_15, %c0_16] : memref<1x128xf32, #tpu.memory_space<vmem>>, vector<1x128xf32>
    %20 = vector.broadcast %19 : vector<1x128xf32> to vector<8x128xf32>
    %21 = arith.addf %18, %20 : vector<8x128xf32>
    %c0_17 = arith.constant 0 : index
    %c0_18 = arith.constant 0 : index
    %22 = vector.load %arg8[%c0_17, %c0_18] : memref<8x128xf32, #tpu.memory_space<vmem>>, vector<8x128xf32>
    tpu.vector_store %arg8[%c0_17, %c0_18], %21 {strides = array<i32>} : memref<8x128xf32, #tpu.memory_space<vmem>>, vector<8x128xf32>,
    return
  }
  func.func @transform_0(%arg0: i32) -> (i32, i32) {
    %c0_i32 = arith.constant 0 : i32
    %c0_i32_0 = arith.constant 0 : i32
    return %arg0, %c0_i32 : i32, i32
  }
  func.func @transform_1(%arg0: i32) -> (i32, i32) {
    %c0_i32 = arith.constant 0 : i32
    %c0_i32_0 = arith.constant 0 : i32
    %c0_i32_1 = arith.constant 0 : i32
    return %c0_i32, %c0_i32_0 : i32, i32
  }
  func.func @transform_2(%arg0: i32) -> (i32, i32) {
    %c0_i32 = arith.constant 0 : i32
    %c0_i32_0 = arith.constant 0 : i32
    %c0_i32_1 = arith.constant 0 : i32
    return %c0_i32, %c0_i32_0 : i32, i32
  }
  func.func @transform_3(%arg0: i32) -> (i32, i32) {
    %c0_i32 = arith.constant 0 : i32
    %c0_i32_0 = arith.constant 0 : i32
    %c0_i32_1 = arith.constant 0 : i32
    return %c0_i32, %c0_i32_0 : i32, i32
  }
  func.func @transform_4(%arg0: i32) -> (i32, i32) {
    %c0_i32 = arith.constant 0 : i32
    %c0_i32_0 = arith.constant 0 : i32
    %c0_i32_1 = arith.constant 0 : i32
    return %c0_i32, %c0_i32_0 : i32, i32
  }
  func.func @transform_5(%arg0: i32) -> (i32, i32) {
    %c0_i32 = arith.constant 0 : i32
    %c0_i32_0 = arith.constant 0 : i32
    %c0_i32_1 = arith.constant 0 : i32
    return %c0_i32, %c0_i32_0 : i32, i32
  }
  func.func @transform_6(%arg0: i32) -> (i32, i32) {
    %c0_i32 = arith.constant 0 : i32
    %c0_i32_0 = arith.constant 0 : i32
    %c0_i32_1 = arith.constant 0 : i32
    return %c0_i32, %c0_i32_0 : i32, i32
  }
  func.func @transform_7(%arg0: i32) -> (i32, i32) {
    %c0_i32 = arith.constant 0 : i32
    %c0_i32_0 = arith.constant 0 : i32
    return %arg0, %c0_i32 : i32, i32
  }
}

</mosaic_0001>

<bundles_post_ra>
// kernel: tpu_custom_call.1
= control target key start
LH: loop header
LB: loop body
LE: loop exit
PB: predicated region body
PF: predicated region fallthrough
CT: control target
= control target key end

     0   :  { %12 = vsyncpa [#allocation3], 0  ;;  %s3806_s0 = inlined_call_operand.hbm [shape: bf16[8,32], index: 0, kind: input, shape index: {}]   ;;  %s3807_s1 = inlined_call_operand.hbm [shape: bf16[32,1024], index: 1, kind: input, shape index: {}]   ;;  %s3808_s2 = inlined_call_operand.hbm [shape: f32[1,1024], index: 2, kind: input, shape index: {}]   ;;  %s3809_s3 = inlined_call_operand.hbm [shape: bf16[1024,512], index: 3, kind: input, shape index: {}]   ;;  %s3810_s4 = inlined_call_operand.vmem [shape: f32[1,512], index: 4, kind: input, shape index: {}]   ;;  %s3811_s5 = inlined_call_operand.hbm [shape: bf16[512,128], index: 5, kind: input, shape index: {}]   ;;  %s3812_s6 = inlined_call_operand.vmem [shape: f32[1,128], index: 6, kind: input, shape index: {}]   ;;  %s3813_s7 = inlined_call_operand.hbm [shape: f32[8,128], index: 7, kind: output, shape index: {}]  }
   0x1   :  { %13 = vsyncpa [#allocation6], 0 }
   0x2   :  { %14 = vsyncpa [#allocation9], 0 }
   0x3   :  { %15 = vsyncpa [#allocation4], 0  ;;  %s3620_s24 = smov [#allocation5]   ;;  %s3480_s28 = scalar_lea.hbm %s3807_s1, 2048 }
   0x4   :  { %s31_s25 = sshll.u32 %s3620_s24, 4  ;;  %p3481_p0 = scmp.ne.s32.totalorder %s3807_s1, %s3480_s28  ;;  %s32_s25 = int_to_ptr.vmem [resolvable:$true] %s31_s25 }
   0x5   :  { %p3484_p1 = scmp.lt.u32.totalorder %s3480_s28, %s3807_s1 }
   0x7   :  { %p3486_p2 = pnand %p3484_p1, %p3481_p0 }
   0x9   :  { %3489 = shalt.err (!%p3486_p2)
}
   0xa   :  { %s3490_s10 = scalar_lea.vmem %s32_s25, 2048  ;;  %p3495_p4 = scmp.lt.s32.totalorder %s32_s25, %s32_s25 }
   0xb   :  { %p3491_p3 = scmp.ne.s32.totalorder %s32_s25, %s3490_s10  ;;  %p3496_p5 = scmp.lt.s32.totalorder %s3490_s10, %s3490_s10 }
   0xd   :  { %p3497_p6 = por %p3496_p5, %p3495_p4 }
   0xf   :  { %p3498_p7 = pnand %p3497_p6, %p3491_p3 }
  0x11   :  { %3501 = shalt.err (!%p3498_p7)
}
  0x12   :  { %s3621_s11 = smov 512   ;;  %s3622_s12 = smov 32  }
  0x13   :  { %37 = dma.hbm_to_vmem [thread:$0]  %s3807_s1, 2048, %s32_s25, [#allocation6], %s3621_s11, %s3621_s11, %s3622_s12  }
  0x14   :  { %s3623_s15 = smov [#allocation8]   ;;  %s3502_s19 = scalar_lea.hbm %s3809_s3, 32768 }
  0x15   :  { %s53_s16 = sshll.u32 %s3623_s15, 4  ;;  %p3503_p8 = scmp.ne.s32.totalorder %s3809_s3, %s3502_s19  ;;  %s54_s16 = int_to_ptr.vmem [resolvable:$true] %s53_s16 }
  0x16   :  { %p3506_p9 = scmp.lt.u32.totalorder %s3502_s19, %s3809_s3 }
  0x18   :  { %p3508_p10 = pnand %p3506_p9, %p3503_p8 }
  0x1a   :  { %3511 = shalt.err (!%p3508_p10)
}
  0x1b   :  { %s3512_s24 = scalar_lea.vmem %s54_s16, 32768  ;;  %p3517_p12 = scmp.lt.s32.totalorder %s54_s16, %s54_s16 }
  0x1c   :  { %p3513_p11 = scmp.ne.s32.totalorder %s54_s16, %s3512_s24  ;;  %p3518_p13 = scmp.lt.s32.totalorder %s3512_s24, %s3512_s24 }
  0x1e   :  { %p3519_p0 = por %p3518_p13, %p3517_p12 }
  0x20   :  { %p3520_p1 = pnand %p3519_p0, %p3513_p11 }
  0x22   :  { %3523 = shalt.err (!%p3520_p1)
}
  0x23   :  { %s3624_s1 = smov 256   ;;  %s3625_s25 = smov 16  }
  0x24   :  { %59 = dma.hbm_to_vmem [thread:$0]  %s3809_s3, 32768, %s54_s16, [#allocation9], %s3624_s1, %s3624_s1, %s3625_s25  }
  0x25   :  { %s3626_s28 = smov [#allocation2]   ;;  %s3627_s30 = smov [#allocation7]  }
  0x26   :  { %s22_s29 = sshll.u32 %s3626_s28, 4  ;;  %s44_s8 = sshll.u32 %s3627_s30, 4  ;;  %s23_s29 = int_to_ptr.vmem [resolvable:$true] %s22_s29  ;;  %s45_s8 = int_to_ptr.vmem [resolvable:$true] %s44_s8 }
  0x27   :  { %s3524_s11 = scalar_lea.hbm %s3806_s0, 64 }
  0x28   :  { %p3525_p2 = scmp.ne.s32.totalorder %s3806_s0, %s3524_s11  ;;  %p3528_p3 = scmp.lt.u32.totalorder %s3524_s11, %s3806_s0 }
  0x2a   :  { %p3530_p4 = pnand %p3528_p3, %p3525_p2 }
  0x2c   :  { %3533 = shalt.err (!%p3530_p4)
}
  0x2d   :  { %s3534_s3 = scalar_lea.vmem %s23_s29, 64  ;;  %p3539_p6 = scmp.lt.s32.totalorder %s23_s29, %s23_s29 }
  0x2e   :  { %p3535_p5 = scmp.ne.s32.totalorder %s23_s29, %s3534_s3  ;;  %p3540_p7 = scmp.lt.s32.totalorder %s3534_s3, %s3534_s3 }
  0x30   :  { %p3541_p8 = por %p3540_p7, %p3539_p6 }
  0x32   :  { %p3542_p9 = pnand %p3541_p8, %p3535_p5 }
  0x34   :  { %3545 = shalt.err (!%p3542_p9)
}
  0x35   :  { %25 = dma.hbm_to_vmem [thread:$0]  %s3806_s0, 64, %s23_s29, [#allocation3]  }
  0x36   :  { %s3546_s20 = scalar_lea.hbm %s3808_s2, 128 }
  0x37   :  { %p3547_p10 = scmp.ne.s32.totalorder %s3808_s2, %s3546_s20  ;;  %p3550_p11 = scmp.lt.u32.totalorder %s3546_s20, %s3808_s2 }
  0x39   :  { %p3552_p12 = pnand %p3550_p11, %p3547_p10 }
  0x3b   :  { %3555 = shalt.err (!%p3552_p12)
}
  0x3c   :  { %s3556_s1 = scalar_lea.vmem %s45_s8, 128  ;;  %p3561_p0 = scmp.lt.s32.totalorder %s45_s8, %s45_s8 }
  0x3d   :  { %p3557_p13 = scmp.ne.s32.totalorder %s45_s8, %s3556_s1  ;;  %p3562_p1 = scmp.lt.s32.totalorder %s3556_s1, %s3556_s1 }
  0x3f   :  { %p3563_p2 = por %p3562_p1, %p3561_p0 }
  0x41   :  { %p3564_p3 = pnand %p3563_p2, %p3557_p13 }
  0x43   :  { %3567 = shalt.err (!%p3564_p3)
}
  0x44   :  { %47 = dma.hbm_to_vmem [thread:$0]  %s3808_s2, 128, %s45_s8, [#allocation6]  }
  0x45   :  { %s3628_s26 = smov [#allocation10]   ;;  %s3568_s30 = scalar_lea.hbm %s3811_s5, 4096 }
  0x46   :  { %s67_s27 = sshll.u32 %s3628_s26, 4  ;;  %p3569_p4 = scmp.ne.s32.totalorder %s3811_s5, %s3568_s30  ;;  %s68_s27 = int_to_ptr.vmem [resolvable:$true] %s67_s27 }
  0x47   :  { %p3572_p5 = scmp.lt.u32.totalorder %s3568_s30, %s3811_s5 }
  0x49   :  { %p3574_p6 = pnand %p3572_p5, %p3569_p4 }
  0x4b   :  { %3577 = shalt.err (!%p3574_p6)
}
  0x4c   :  { %s3578_s13 = scalar_lea.vmem %s68_s27, 4096  ;;  %p3583_p8 = scmp.lt.s32.totalorder %s68_s27, %s68_s27 }
  0x4d   :  { %p3579_p7 = scmp.ne.s32.totalorder %s68_s27, %s3578_s13  ;;  %p3584_p9 = scmp.lt.s32.totalorder %s3578_s13, %s3578_s13 }
  0x4f   :  { %p3585_p10 = por %p3584_p9, %p3583_p8 }
  0x51   :  { %p3586_p11 = pnand %p3585_p10, %p3579_p7 }
  0x53   :  { %3589 = shalt.err (!%p3586_p11)
}
  0x54   :  { %s3629_s2 = smov 64   ;;  %s3630_s8 = smov 4  }
  0x55   :  { %73 = dma.hbm_to_vmem [thread:$0]  %s3811_s5, 4096, %s68_s27, [#allocation9], %s3629_s2, %s3629_s2, %s3630_s8  }
  0x56   :  { %3612 = dma.done.wait [#allocation3], 64  }
  0x57   :  { %3613 = vsyncadd [#allocation3], 4294967232 }
  0x58   :  { %3614 = dma.done.wait [#allocation6], 2176  }
  0x59   :  { %3615 = vsyncadd [#allocation6], 4294965120 }
  0x5a   :  { %3616 = dma.done.wait [#allocation9], 36864  }
  0x5b   :  { %3617 = vsyncadd [#allocation9], 4294930432  ;;  %v3631_v0 = vmov 0   ;;  %v93_v1 = vld [vmem:[#allocation5] sm:$0xff]  ;;  %v94_v7 = vld [vmem:[#allocation5 + $0x8] sm:$0xff]  ;;  %vm231_vm0 = vcmask 261120  }
  0x5c   :  { %267 = vmatprep.mubr.bf16.mxu0 %v3631_v0  ;;  %308 = vmatprep.mubr.bf16.mxu1 %v3631_v0  ;;  %v97_v2 = vld [vmem:[#allocation5 + $0x20] sm:$0xff]  ;;  %v98_v9 = vld [vmem:[#allocation5 + $0x28] sm:$0xff]  ;;  %v95_v15 = vld [vmem:[#allocation5 + $0x10] sm:$0xff]  ;;  %s3632_s17 = smov [#allocation11]  }
  0x5d   :  { %v101_v3 = vld [vmem:[#allocation5 + $0x40] sm:$0xff]  ;;  %v2671_v4 = vcombine.high %v93_v1, %v97_v2  ;;  %v2670_v5 = vcombine.low %v93_v1, %v97_v2  ;;  %v102_v10 = vld [vmem:[#allocation5 + $0x48] sm:$0xff]  ;;  %v2673_v12 = vcombine.high %v94_v7, %v98_v9  ;;  %v2672_v13 = vcombine.low %v94_v7, %v98_v9  ;;  %v99_v16 = vld [vmem:[#allocation5 + $0x30] sm:$0xff]  ;;  %s2659_s18 = sshll.u32 %s3632_s17, 4  ;;  %s2660_s18 = int_to_ptr.vmem [resolvable:$true] %s2659_s18 }
  0x5e   :  { %v105_v6 = vld [vmem:[#allocation5 + $0x60] sm:$0xff]  ;;  %v106_v11 = vld [vmem:[#allocation5 + $0x68] sm:$0xff]  ;;  %v96_v18 = vld [vmem:[#allocation5 + $0x18] sm:$0xff]  ;;  %v2675_v20 = vcombine.high %v95_v15, %v99_v16  ;;  %v2674_v27 = vcombine.low %v95_v15, %v99_v16  ;;  %s3590_s19 = scalar_lea.vmem %s2660_s18, 128  ;;  %p3595_p13 = scmp.lt.s32.totalorder %s2660_s18, %s2660_s18 }
  0x5f   :  { %v2679_v8 = vcombine.high %v101_v3, %v105_v6  ;;  %235 = vmatprep.subr.bf16.mxu0 %v2671_v4  ;;  %v2681_v14 = vcombine.high %v102_v10, %v106_v11  ;;  %v2678_v17 = vcombine.low %v101_v3, %v105_v6  ;;  %v100_v19 = vld [vmem:[#allocation5 + $0x38] sm:$0xff]  ;;  %276 = vmatprep.subr.bf16.mxu1 %v2673_v12  ;;  %v103_v23 = vld [vmem:[#allocation5 + $0x50] sm:$0xff]  ;;  %p3591_p12 = scmp.ne.s32.totalorder %s2660_s18, %s3590_s19  ;;  %p3596_p0 = scmp.lt.s32.totalorder %s3590_s19, %s3590_s19 }
  0x60   :  { %236 = vmatpush1.bf16.msra.mxu0 %v2670_v5  ;;  %v92_v21 = vld [vmem:[#allocation2] sm:$0xf]  ;;  %277 = vmatpush1.bf16.msra.mxu1 %v2672_v13  ;;  %v2680_v22 = vcombine.low %v102_v10, %v106_v11  ;;  %v107_v24 = vld [vmem:[#allocation5 + $0x70] sm:$0xff]  ;;  %v2677_v25 = vcombine.high %v96_v18, %v100_v19  ;;  %v2676_v30 = vcombine.low %v96_v18, %v100_v19  ;;  %v3064_v36 = vld [vmem:[#allocation8] ss:$16 sps:$4 sm:$0xff]  }
  0x61   :  { %237 = vmatprep.subr.bf16.mxu0 %v2679_v8  ;;  %278 = vmatprep.subr.bf16.mxu1 %v2681_v14  ;;  %v104_v26 = vld [vmem:[#allocation5 + $0x58] sm:$0xff]  ;;  %v2683_v29 = vcombine.high %v103_v23, %v107_v24  ;;  %v2682_v32 = vcombine.low %v103_v23, %v107_v24  ;;  %v3069_v35 = vld [vmem:[#allocation8 + $0xc] ss:$16 sps:$4 sm:$0xff]   ;;  %v3067_v38 = vld [vmem:[#allocation8 + $0x8] ss:$16 sps:$4 sm:$0xff]   ;;  %p3597_p1 = por %p3596_p0, %p3595_p13 }
  0x62   :  { %v108_v28 = vld [vmem:[#allocation5 + $0x78] sm:$0xff]  ;;  %v3075_v39 = vld [vmem:[#allocation8 + $0x2c] ss:$16 sps:$4 sm:$0xff]   ;;  %v3073_v42 = vld [vmem:[#allocation8 + $0x28] ss:$16 sps:$4 sm:$0xff]  }
  0x63   :  { %v2685_v31 = vcombine.high %v104_v26, %v108_v28  ;;  %v3066_v33 = vld [vmem:[#allocation8 + $0x4] ss:$16 sps:$4 sm:$0xff]   ;;  %v2684_v34 = vcombine.low %v104_v26, %v108_v28  ;;  %v3070_v40 = vld [vmem:[#allocation8 + $0x20] ss:$16 sps:$4 sm:$0xff]   ;;  %v3081_v43 = vld [vmem:[#allocation8 + $0x4c] ss:$16 sps:$4 sm:$0xff]   ;;  %p3598_p2 = pnand %p3597_p1, %p3591_p12 }
  0x64   :  { %238 = vmatpush1.bf16.msra.mxu0 %v2678_v17  ;;  %279 = vmatpush1.bf16.msra.mxu1 %v2680_v22  ;;  %v3072_v37 = vld [vmem:[#allocation8 + $0x24] ss:$16 sps:$4 sm:$0xff]   ;;  %v3076_v44 = vld [vmem:[#allocation8 + $0x40] ss:$16 sps:$4 sm:$0xff]   ;;  %v3079_v46 = vld [vmem:[#allocation8 + $0x48] ss:$16 sps:$4 sm:$0xff]  }
  0x65   :  { %317 = vmatprep.subr.bf16.mxu0 %v2675_v20  ;;  %358 = vmatprep.subr.bf16.mxu1 %v2677_v25  ;;  %v3078_v41 = vld [vmem:[#allocation8 + $0x44] ss:$16 sps:$4 sm:$0xff]   ;;  %v3087_v47 = vld [vmem:[#allocation8 + $0x6c] ss:$16 sps:$4 sm:$0xff]   ;;  %v3082_v48 = vld [vmem:[#allocation8 + $0x60] ss:$16 sps:$4 sm:$0xff]  }
  0x66   :  { %v3084_v45 = vld [vmem:[#allocation8 + $0x64] ss:$16 sps:$4 sm:$0xff]   ;;  %v3085_v50 = vld [vmem:[#allocation8 + $0x68] ss:$16 sps:$4 sm:$0xff]   ;;  %v3093_v51 = vld [vmem:[#allocation8 + $0x8c] ss:$16 sps:$4 sm:$0xff]  }
  0x67   :  { %2686 = vmatmul.mubr.msk.bf16.vlgmr.msra.gmra.mrb[0].mxu0 %vm231_vm0, %v92_v21  ;;  %2687 = vmatmul.mubr.msk.bf16.vlgmr.msra.gmra.mrb[0].mxu1 %vm231_vm0, %v92_v21  ;;  %v3090_v49 = vld [vmem:[#allocation8 + $0x84] ss:$16 sps:$4 sm:$0xff]   ;;  %v3088_v52 = vld [vmem:[#allocation8 + $0x80] ss:$16 sps:$4 sm:$0xff]   ;;  %v3091_v54 = vld [vmem:[#allocation8 + $0x88] ss:$16 sps:$4 sm:$0xff]  }
  0x68   :  { %318 = vmatpush1.bf16.msra.mxu0 %v2674_v27  ;;  %349 = vmatprep.mubr.bf16.mxu0 %v3631_v0  ;;  %v3096_v53 = vld [vmem:[#allocation8 + $0xa4] ss:$16 sps:$4 sm:$0xff]   ;;  %v3099_v55 = vld [vmem:[#allocation8 + $0xac] ss:$16 sps:$4 sm:$0xff]   ;;  %v3094_v56 = vld [vmem:[#allocation8 + $0xa0] ss:$16 sps:$4 sm:$0xff]  }
  0x69   :  { %319 = vmatprep.subr.bf16.mxu0 %v2683_v29  ;;  %359 = vmatpush1.bf16.msra.mxu1 %v2676_v30  ;;  %v3102_v57 = vld [vmem:[#allocation8 + $0xc4] ss:$16 sps:$4 sm:$0xff]   ;;  %v3097_v58 = vld [vmem:[#allocation8 + $0xa8] ss:$16 sps:$4 sm:$0xff]   ;;  %v3105_v59 = vld [vmem:[#allocation8 + $0xcc] ss:$16 sps:$4 sm:$0xff]  }
  0x6a   :  { %390 = vmatprep.mubr.bf16.mxu1 %v3631_v0  ;;  %360 = vmatprep.subr.bf16.mxu1 %v2685_v31  ;;  %v3100_v60 = vld [vmem:[#allocation8 + $0xc0] ss:$16 sps:$4 sm:$0xff]   ;;  %v3103_v61 = vld [vmem:[#allocation8 + $0xc8] ss:$16 sps:$4 sm:$0xff]   ;;  %v3108_v62 = vld [vmem:[#allocation8 + $0xe4] ss:$16 sps:$4 sm:$0xff]  }
  0x6b   :  { %v3106_v63 = vld [vmem:[#allocation8 + $0xe0] ss:$16 sps:$4 sm:$0xff]   ;;  %v3111_v0 = vld [vmem:[#allocation8 + $0xec] ss:$16 sps:$4 sm:$0xff]   ;;  %v3114_v1 = vld [vmem:[#allocation8 + $0x104] ss:$16 sps:$4 sm:$0xff]  }
  0x6c   :  { %320 = vmatpush1.bf16.msra.mxu0 %v2682_v32  ;;  %v3109_v2 = vld [vmem:[#allocation8 + $0xe8] ss:$16 sps:$4 sm:$0xff]   ;;  %v3117_v3 = vld [vmem:[#allocation8 + $0x10c] ss:$16 sps:$4 sm:$0xff]   ;;  %v3112_v4 = vld [vmem:[#allocation8 + $0x100] ss:$16 sps:$4 sm:$0xff]  }
  0x6d   :  { %1973 = vmatprep.subr.bf16.mxu0 %v3066_v33  ;;  %361 = vmatpush1.bf16.msra.mxu1 %v2684_v34  ;;  %v3120_v5 = vld [vmem:[#allocation8 + $0x124] ss:$16 sps:$4 sm:$0xff]   ;;  %v3115_v6 = vld [vmem:[#allocation8 + $0x108] ss:$16 sps:$4 sm:$0xff]   ;;  %v3123_v7 = vld [vmem:[#allocation8 + $0x12c] ss:$16 sps:$4 sm:$0xff]  }
  0x6e   :  { %2137 = vmatprep.subr.bf16.mxu1 %v3069_v35  ;;  %v3118_v8 = vld [vmem:[#allocation8 + $0x120] ss:$16 sps:$4 sm:$0xff]   ;;  %v3126_v9 = vld [vmem:[#allocation8 + $0x144] ss:$16 sps:$4 sm:$0xff]   ;;  %v3121_v10 = vld [vmem:[#allocation8 + $0x128] ss:$16 sps:$4 sm:$0xff]  }
  0x6f   :  { %2688 = vmatmul.mubr.msk.bf16.vlgmr.msra.gmra.mrb[4].mxu0 %vm231_vm0, %v92_v21  ;;  %v3129_v11 = vld [vmem:[#allocation8 + $0x14c] ss:$16 sps:$4 sm:$0xff]   ;;  %v3124_v12 = vld [vmem:[#allocation8 + $0x140] ss:$16 sps:$4 sm:$0xff]   ;;  %v3132_v13 = vld [vmem:[#allocation8 + $0x164] ss:$16 sps:$4 sm:$0xff]  }
  0x70   :  { %1974 = vmatpush1.bf16.msra.mxu0 %v3064_v36  ;;  %2689 = vmatmul.mubr.msk.bf16.vlgmr.msra.gmra.mrb[4].mxu1 %vm231_vm0, %v92_v21  ;;  %v3127_v14 = vld [vmem:[#allocation8 + $0x148] ss:$16 sps:$4 sm:$0xff]   ;;  %v3135_v15 = vld [vmem:[#allocation8 + $0x16c] ss:$16 sps:$4 sm:$0xff]   ;;  %v3130_v16 = vld [vmem:[#allocation8 + $0x160] ss:$16 sps:$4 sm:$0xff]   ;;  %v111_v36 = vlaneseq }
  0x71   :  { %1975 = vmatprep.subr.bf16.mxu0 %v3072_v37  ;;  %2138 = vmatpush1.bf16.msra.mxu1 %v3067_v38  ;;  %v3138_v17 = vld [vmem:[#allocation8 + $0x184] ss:$16 sps:$4 sm:$0xff]   ;;  %v3133_v18 = vld [vmem:[#allocation8 + $0x168] ss:$16 sps:$4 sm:$0xff]   ;;  %v3141_v19 = vld [vmem:[#allocation8 + $0x18c] ss:$16 sps:$4 sm:$0xff]  }
  0x72   :  { %2139 = vmatprep.subr.bf16.mxu1 %v3075_v39  ;;  %v3136_v20 = vld [vmem:[#allocation8 + $0x180] ss:$16 sps:$4 sm:$0xff]   ;;  %v3144_v21 = vld [vmem:[#allocation8 + $0x1a4] ss:$16 sps:$4 sm:$0xff]   ;;  %v3139_v22 = vld [vmem:[#allocation8 + $0x188] ss:$16 sps:$4 sm:$0xff]  }
  0x73   :  { %v3147_v23 = vld [vmem:[#allocation8 + $0x1ac] ss:$16 sps:$4 sm:$0xff]   ;;  %v3142_v24 = vld [vmem:[#allocation8 + $0x1a0] ss:$16 sps:$4 sm:$0xff]   ;;  %v3145_v25 = vld [vmem:[#allocation8 + $0x1a8] ss:$16 sps:$4 sm:$0xff]  }
  0x74   :  { %1976 = vmatpush1.bf16.msra.mxu0 %v3070_v40  ;;  %v3150_v26 = vld [vmem:[#allocation8 + $0x1c4] ss:$16 sps:$4 sm:$0xff]   ;;  %v3153_v27 = vld [vmem:[#allocation8 + $0x1cc] ss:$16 sps:$4 sm:$0xff]   ;;  %v3148_v28 = vld [vmem:[#allocation8 + $0x1c0] ss:$16 sps:$4 sm:$0xff]  }
  0x75   :  { %1977 = vmatprep.subr.bf16.mxu0 %v3078_v41  ;;  %2140 = vmatpush1.bf16.msra.mxu1 %v3073_v42  ;;  %v3151_v29 = vld [vmem:[#allocation8 + $0x1c8] ss:$16 sps:$4 sm:$0xff]   ;;  %v3156_v30 = vld [vmem:[#allocation8 + $0x1e4] ss:$16 sps:$4 sm:$0xff]   ;;  %v3159_v31 = vld [vmem:[#allocation8 + $0x1ec] ss:$16 sps:$4 sm:$0xff]  }
  0x76   :  { %2141 = vmatprep.subr.bf16.mxu1 %v3081_v43  ;;  %v3154_v32 = vld [vmem:[#allocation8 + $0x1e0] ss:$16 sps:$4 sm:$0xff]   ;;  %v3157_v33 = vld [vmem:[#allocation8 + $0x1e8] ss:$16 sps:$4 sm:$0xff]   ;;  %v3162_v34 = vld [vmem:[#allocation8 + $0x204] ss:$16 sps:$4 sm:$0xff]  }
  0x77   :  { %v3165_v35 = vld [vmem:[#allocation8 + $0x20c] ss:$16 sps:$4 sm:$0xff]   ;;  %v3737_v37 = vshrl.u32 %v111_v36, 7  ;;  %v3210_v36 = vld [vmem:[#allocation8 + $0x304] ss:$16 sps:$4 sm:$0xff]  }
  0x78   :  { %1978 = vmatpush1.bf16.msra.mxu0 %v3076_v44  ;;  %v3740_v39 = vld [vmem:[#allocation7] sm:$0xff] }
  0x79   :  { %1979 = vmatprep.subr.bf16.mxu0 %v3084_v45  ;;  %2142 = vmatpush1.bf16.msra.mxu1 %v3079_v46  ;;  %v113_v38 = vsub.s32 0, %v3737_v37  ;;  %v117_v40 = vsub.s32 1, %v3737_v37  ;;  %v125_v41 = vsub.s32 3, %v3737_v37 }
  0x7a   :  { %2143 = vmatprep.subr.bf16.mxu1 %v3087_v47 }
  0x7b   :  { %v114_v42 = vrot.slane %v3740_v39, %v113_v38  ;;  %v118_v43 = vrot.slane %v3740_v39, %v117_v40  ;;  %v126_v45 = vrot.slane %v3740_v39, %v125_v41 }
  0x7c   :  { %1980 = vmatpush1.bf16.msra.mxu0 %v3082_v48 }
  0x7d   :  { %1981 = vmatprep.subr.bf16.mxu0 %v3090_v49  ;;  %2144 = vmatpush1.bf16.msra.mxu1 %v3085_v50 }
  0x7e   :  { %2145 = vmatprep.subr.bf16.mxu1 %v3093_v51 }
  0x80   :  { %1982 = vmatpush1.bf16.msra.mxu0 %v3088_v52 }
  0x81   :  { %1983 = vmatprep.subr.bf16.mxu0 %v3096_v53  ;;  %2146 = vmatpush1.bf16.msra.mxu1 %v3091_v54 }
  0x82   :  { %2147 = vmatprep.subr.bf16.mxu1 %v3099_v55 }
  0x84   :  { %1984 = vmatpush1.bf16.msra.mxu0 %v3094_v56 }
  0x85   :  { %1985 = vmatprep.subr.bf16.mxu0 %v3102_v57  ;;  %2148 = vmatpush1.bf16.msra.mxu1 %v3097_v58 }
  0x86   :  { %2149 = vmatprep.subr.bf16.mxu1 %v3105_v59  ;;  %v3160_v59 = vld [vmem:[#allocation8 + $0x200] ss:$16 sps:$4 sm:$0xff]  }
  0x88   :  { %1986 = vmatpush1.bf16.msra.mxu0 %v3100_v60  ;;  %v3163_v60 = vld [vmem:[#allocation8 + $0x208] ss:$16 sps:$4 sm:$0xff]  }
  0x89   :  { %1987 = vmatprep.subr.bf16.mxu0 %v3108_v62  ;;  %2150 = vmatpush1.bf16.msra.mxu1 %v3103_v61 }
  0x8a   :  { %2151 = vmatprep.subr.bf16.mxu1 %v3111_v0  ;;  %v3171_v0 = vld [vmem:[#allocation8 + $0x22c] ss:$16 sps:$4 sm:$0xff]  }
  0x8c   :  { %1988 = vmatpush1.bf16.msra.mxu0 %v3106_v63  ;;  %v3168_v63 = vld [vmem:[#allocation8 + $0x224] ss:$16 sps:$4 sm:$0xff]  }
  0x8d   :  { %1989 = vmatprep.subr.bf16.mxu0 %v3114_v1  ;;  %2152 = vmatpush1.bf16.msra.mxu1 %v3109_v2 }
  0x8e   :  { %2153 = vmatprep.subr.bf16.mxu1 %v3117_v3 }
  0x90   :  { %1990 = vmatpush1.bf16.msra.mxu0 %v3112_v4  ;;  %v3166_v4 = vld [vmem:[#allocation8 + $0x220] ss:$16 sps:$4 sm:$0xff]  }
  0x91   :  { %1991 = vmatprep.subr.bf16.mxu0 %v3120_v5  ;;  %2154 = vmatpush1.bf16.msra.mxu1 %v3115_v6  ;;  %v3169_v5 = vld [vmem:[#allocation8 + $0x228] ss:$16 sps:$4 sm:$0xff]  }
  0x92   :  { %2155 = vmatprep.subr.bf16.mxu1 %v3123_v7  ;;  %v3174_v7 = vld [vmem:[#allocation8 + $0x244] ss:$16 sps:$4 sm:$0xff]  }
  0x94   :  { %1992 = vmatpush1.bf16.msra.mxu0 %v3118_v8  ;;  %v3177_v8 = vld [vmem:[#allocation8 + $0x24c] ss:$16 sps:$4 sm:$0xff]  }
  0x95   :  { %1993 = vmatprep.subr.bf16.mxu0 %v3126_v9  ;;  %2156 = vmatpush1.bf16.msra.mxu1 %v3121_v10  ;;  %v3172_v10 = vld [vmem:[#allocation8 + $0x240] ss:$16 sps:$4 sm:$0xff]  }
  0x96   :  { %2157 = vmatprep.subr.bf16.mxu1 %v3129_v11  ;;  %v3175_v11 = vld [vmem:[#allocation8 + $0x248] ss:$16 sps:$4 sm:$0xff]  }
  0x98   :  { %1994 = vmatpush1.bf16.msra.mxu0 %v3124_v12  ;;  %v3180_v12 = vld [vmem:[#allocation8 + $0x264] ss:$16 sps:$4 sm:$0xff]  }
  0x99   :  { %1995 = vmatprep.subr.bf16.mxu0 %v3132_v13  ;;  %2158 = vmatpush1.bf16.msra.mxu1 %v3127_v14  ;;  %v3183_v13 = vld [vmem:[#allocation8 + $0x26c] ss:$16 sps:$4 sm:$0xff]   ;;  %v3178_v14 = vld [vmem:[#allocation8 + $0x260] ss:$16 sps:$4 sm:$0xff]  }
  0x9a   :  { %2159 = vmatprep.subr.bf16.mxu1 %v3135_v15  ;;  %v3181_v15 = vld [vmem:[#allocation8 + $0x268] ss:$16 sps:$4 sm:$0xff]  }
  0x9c   :  { %1996 = vmatpush1.bf16.msra.mxu0 %v3130_v16  ;;  %v3186_v16 = vld [vmem:[#allocation8 + $0x284] ss:$16 sps:$4 sm:$0xff]  }
  0x9d   :  { %1997 = vmatprep.subr.bf16.mxu0 %v3138_v17  ;;  %2160 = vmatpush1.bf16.msra.mxu1 %v3133_v18  ;;  %v3189_v17 = vld [vmem:[#allocation8 + $0x28c] ss:$16 sps:$4 sm:$0xff]   ;;  %v3184_v18 = vld [vmem:[#allocation8 + $0x280] ss:$16 sps:$4 sm:$0xff]  }
  0x9e   :  { %2161 = vmatprep.subr.bf16.mxu1 %v3141_v19  ;;  %v3187_v19 = vld [vmem:[#allocation8 + $0x288] ss:$16 sps:$4 sm:$0xff]  }
  0xa0   :  { %1998 = vmatpush1.bf16.msra.mxu0 %v3136_v20  ;;  %v3192_v20 = vld [vmem:[#allocation8 + $0x2a4] ss:$16 sps:$4 sm:$0xff]  }
  0xa1   :  { %1999 = vmatprep.subr.bf16.mxu0 %v3144_v21  ;;  %2162 = vmatpush1.bf16.msra.mxu1 %v3139_v22  ;;  %v3195_v21 = vld [vmem:[#allocation8 + $0x2ac] ss:$16 sps:$4 sm:$0xff]   ;;  %v3190_v22 = vld [vmem:[#allocation8 + $0x2a0] ss:$16 sps:$4 sm:$0xff]  }
  0xa2   :  { %2163 = vmatprep.subr.bf16.mxu1 %v3147_v23  ;;  %v3193_v23 = vld [vmem:[#allocation8 + $0x2a8] ss:$16 sps:$4 sm:$0xff]  }
  0xa4   :  { %2000 = vmatpush1.bf16.msra.mxu0 %v3142_v24 }
  0xa5   :  { %2164 = vmatpush1.bf16.msra.mxu1 %v3145_v25  ;;  %2001 = vmatprep.subr.bf16.mxu0 %v3150_v26  ;;  %v3198_v25 = vld [vmem:[#allocation8 + $0x2c4] ss:$16 sps:$4 sm:$0xff]   ;;  %v3201_v26 = vld [vmem:[#allocation8 + $0x2cc] ss:$16 sps:$4 sm:$0xff]  }
  0xa6   :  { %2165 = vmatprep.subr.bf16.mxu1 %v3153_v27 }
  0xa8   :  { %2002 = vmatpush1.bf16.msra.mxu0 %v3148_v28 }
  0xa9   :  { %2166 = vmatpush1.bf16.msra.mxu1 %v3151_v29  ;;  %2003 = vmatprep.subr.bf16.mxu0 %v3156_v30  ;;  %v3196_v30 = vld [vmem:[#allocation8 + $0x2c0] ss:$16 sps:$4 sm:$0xff]  }
  0xaa   :  { %2167 = vmatprep.subr.bf16.mxu1 %v3159_v31  ;;  %v3199_v31 = vld [vmem:[#allocation8 + $0x2c8] ss:$16 sps:$4 sm:$0xff]  }
  0xac   :  { %2004 = vmatpush1.bf16.msra.mxu0 %v3154_v32  ;;  %v3204_v32 = vld [vmem:[#allocation8 + $0x2e4] ss:$16 sps:$4 sm:$0xff]  }
  0xad   :  { %2168 = vmatpush1.bf16.msra.mxu1 %v3157_v33  ;;  %2014 = vmatprep.subr.bf16.mxu0 %v3162_v34  ;;  %v3207_v33 = vld [vmem:[#allocation8 + $0x2ec] ss:$16 sps:$4 sm:$0xff]   ;;  %v3202_v34 = vld [vmem:[#allocation8 + $0x2e0] ss:$16 sps:$4 sm:$0xff]  }
  0xae   :  { %2178 = vmatprep.subr.bf16.mxu1 %v3165_v35  ;;  %v3205_v35 = vld [vmem:[#allocation8 + $0x2e8] ss:$16 sps:$4 sm:$0xff]  }
 0x13a   :  { %v269_v44 = vpop.f32.mrb[0].mxu0  ;;  %v3753_v50 = vpop.f32.mrb[0].mxu1 }
 0x13b   :  { %v270_v46 = vadd.f32 %v269_v44, %v114_v42  ;;  %v271_v47 = vpop.f32.mrb[1].mxu0  ;;  %v312_v53 = vpop.f32.mrb[1].mxu1  ;;  %v3213_v42 = vld [vmem:[#allocation8 + $0x30c] ss:$16 sps:$4 sm:$0xff]   ;;  %v3211_v44 = vld [vmem:[#allocation8 + $0x308] ss:$16 sps:$4 sm:$0xff]  }
 0x13c   :  { %v272_v48 = vadd.f32 %v271_v47, %v118_v43  ;;  %v273_v49 = vpop.f32.mrb[2].mxu0  ;;  %v313_v55 = vadd.f32 %v312_v53, %v126_v45  ;;  %v314_v56 = vpop.f32.mrb[2].mxu1  ;;  %v3208_v43 = vld [vmem:[#allocation8 + $0x300] ss:$16 sps:$4 sm:$0xff]   ;;  %v3216_v45 = vld [vmem:[#allocation8 + $0x324] ss:$16 sps:$4 sm:$0xff]  }
 0x13d   :  { %v399_v51 = vmax.f32 %v270_v46, 0.0  ;;  %v274_v52 = vpop.f32.mrb[3].mxu0  ;;  %v315_v57 = vpop.f32.mrb[3].mxu1  ;;  %v3219_v46 = vld [vmem:[#allocation8 + $0x32c] ss:$16 sps:$4 sm:$0xff]  }
 0x13e   :  { %v400_v54 = vmax.f32 %v272_v48, 0.0  ;;  %v402_v61 = vmax.f32 %v313_v55, 0.0  ;;  %v3214_v47 = vld [vmem:[#allocation8 + $0x320] ss:$16 sps:$4 sm:$0xff]   ;;  %v3217_v48 = vld [vmem:[#allocation8 + $0x328] ss:$16 sps:$4 sm:$0xff]  }
 0x13f   :  { %v407_v62 = vpack.c.bf16 %v399_v51, %v399_v51  ;;  %v3222_v49 = vld [vmem:[#allocation8 + $0x344] ss:$16 sps:$4 sm:$0xff]   ;;  %v3225_v51 = vld [vmem:[#allocation8 + $0x34c] ss:$16 sps:$4 sm:$0xff]   ;;  %v3220_v52 = vld [vmem:[#allocation8 + $0x340] ss:$16 sps:$4 sm:$0xff]  }
 0x140   :  { %v408_v58 = vpack.c.bf16 %v400_v54, %v400_v54  ;;  %v410_v1 = vpack.c.bf16 %v402_v61, %v402_v61  ;;  %v3223_v53 = vld [vmem:[#allocation8 + $0x348] ss:$16 sps:$4 sm:$0xff]   ;;  %v3228_v54 = vld [vmem:[#allocation8 + $0x364] ss:$16 sps:$4 sm:$0xff]   ;;  %v3231_v55 = vld [vmem:[#allocation8 + $0x36c] ss:$16 sps:$4 sm:$0xff]  }
 0x141   :  { %v3226_v56 = vld [vmem:[#allocation8 + $0x360] ss:$16 sps:$4 sm:$0xff]   ;;  %v3229_v57 = vld [vmem:[#allocation8 + $0x368] ss:$16 sps:$4 sm:$0xff]  }
 0x142   :  { %2005 = vmatprep.mubr.bf16.mxu0 %v408_v58  ;;  %2169 = vmatprep.mubr.bf16.mxu1 %v408_v58  ;;  %v3755_v2 = vpop.f32.mrb[4].mxu0  ;;  %v3234_v58 = vld [vmem:[#allocation8 + $0x384] ss:$16 sps:$4 sm:$0xff]   ;;  %v3232_v61 = vld [vmem:[#allocation8 + $0x380] ss:$16 sps:$4 sm:$0xff]  }
 0x143   :  { %2006 = vmatmul.mubr.bf16.vlgmr.msra.gmra.mrb[8].mxu0 %v407_v62  ;;  %2170 = vmatmul.mubr.bf16.vlgmr.msra.gmra.mrb[8].mxu1 %v407_v62  ;;  %v3757_v3 = vpop.f32.mrb[5].mxu0  ;;  %v3759_v24 = vpop.f32.mrb[4].mxu1  ;;  %v3235_v62 = vld [vmem:[#allocation8 + $0x388] ss:$16 sps:$4 sm:$0xff]  }
 0x144   :  { %2015 = vmatpush1.bf16.msra.mxu0 %v3160_v59  ;;  %2179 = vmatpush1.bf16.msra.mxu1 %v3163_v60  ;;  %v355_v6 = vpop.f32.mrb[6].mxu0  ;;  %v3761_v27 = vpop.f32.mrb[5].mxu1  ;;  %v3237_v59 = vld [vmem:[#allocation8 + $0x38c] ss:$16 sps:$4 sm:$0xff]   ;;  %v121_v60 = vsub.s32 2, %v3737_v37 }
 0x145   :  { %2016 = vmatprep.subr.bf16.mxu0 %v3168_v63  ;;  %2180 = vmatprep.subr.bf16.mxu1 %v3171_v0  ;;  %v356_v9 = vpop.f32.mrb[7].mxu0  ;;  %v396_v28 = vpop.f32.mrb[6].mxu1  ;;  %v3240_v63 = vld [vmem:[#allocation8 + $0x3a4] ss:$16 sps:$4 sm:$0xff]   ;;  %v3243_v0 = vld [vmem:[#allocation8 + $0x3ac] ss:$16 sps:$4 sm:$0xff]  }
 0x146   :  { %2046 = vmatprep.mubr.bf16.mxu0 %v410_v1  ;;  %2210 = vmatprep.mubr.bf16.mxu1 %v410_v1  ;;  %v397_v29 = vpop.f32.mrb[7].mxu1  ;;  %v133_v1 = vsub.s32 5, %v3737_v37  ;;  %v3241_v6 = vld [vmem:[#allocation8 + $0x3a8] ss:$16 sps:$4 sm:$0xff]   ;;  %v3262_v28 = vld [vmem:[#allocation8 + $0x420] ss:$16 sps:$4 sm:$0xff]  }
 0x147   :  { %v3265_v29 = vld [vmem:[#allocation8 + $0x428] ss:$16 sps:$4 sm:$0xff]  }
 0x148   :  { %2017 = vmatpush1.bf16.msra.mxu0 %v3166_v4  ;;  %2181 = vmatpush1.bf16.msra.mxu1 %v3169_v5  ;;  %v122_v4 = vrot.slane %v3740_v39, %v121_v60  ;;  %v3238_v5 = vld [vmem:[#allocation8 + $0x3a0] ss:$16 sps:$4 sm:$0xff]   ;;  %v134_v9 = vrot.slane %v3740_v39, %v133_v1  ;;  %v3312_v1 = vld [vmem:[#allocation8 + $0x524] ss:$16 sps:$4 sm:$0xff]  }
 0x149   :  { %2018 = vmatprep.subr.bf16.mxu0 %v3174_v7  ;;  %2182 = vmatprep.subr.bf16.mxu1 %v3177_v8  ;;  %v3246_v7 = vld [vmem:[#allocation8 + $0x3c4] ss:$16 sps:$4 sm:$0xff]   ;;  %v3249_v8 = vld [vmem:[#allocation8 + $0x3cc] ss:$16 sps:$4 sm:$0xff]  }
 0x14c   :  { %2019 = vmatpush1.bf16.msra.mxu0 %v3172_v10  ;;  %2183 = vmatpush1.bf16.msra.mxu1 %v3175_v11  ;;  %v311_v10 = vadd.f32 %v3753_v50, %v122_v4  ;;  %v3244_v11 = vld [vmem:[#allocation8 + $0x3c0] ss:$16 sps:$4 sm:$0xff]   ;;  %v3315_v4 = vld [vmem:[#allocation8 + $0x52c] ss:$16 sps:$4 sm:$0xff]  }
 0x14d   :  { %2020 = vmatprep.subr.bf16.mxu0 %v3180_v12  ;;  %2184 = vmatprep.subr.bf16.mxu1 %v3183_v13  ;;  %v3247_v12 = vld [vmem:[#allocation8 + $0x3c8] ss:$16 sps:$4 sm:$0xff]   ;;  %v3252_v13 = vld [vmem:[#allocation8 + $0x3e4] ss:$16 sps:$4 sm:$0xff]  }
 0x150   :  { %2021 = vmatpush1.bf16.msra.mxu0 %v3178_v14  ;;  %2185 = vmatpush1.bf16.msra.mxu1 %v3181_v15  ;;  %v3255_v14 = vld [vmem:[#allocation8 + $0x3ec] ss:$16 sps:$4 sm:$0xff]   ;;  %v354_v15 = vadd.f32 %v3757_v3, %v134_v9  ;;  %v3316_v9 = vld [vmem:[#allocation8 + $0x540] ss:$16 sps:$4 sm:$0xff]  }
 0x151   :  { %2022 = vmatprep.subr.bf16.mxu0 %v3186_v16  ;;  %2186 = vmatprep.subr.bf16.mxu1 %v3189_v17  ;;  %v401_v16 = vmax.f32 %v311_v10, 0.0  ;;  %v3250_v17 = vld [vmem:[#allocation8 + $0x3e0] ss:$16 sps:$4 sm:$0xff]   ;;  %v3319_v10 = vld [vmem:[#allocation8 + $0x548] ss:$16 sps:$4 sm:$0xff]  }
 0x152   :  { %v404_v50 = vmax.f32 %v354_v15, 0.0  ;;  %v3330_v15 = vld [vmem:[#allocation8 + $0x584] ss:$16 sps:$4 sm:$0xff]  }
 0x154   :  { %2023 = vmatpush1.bf16.msra.mxu0 %v3184_v18  ;;  %2187 = vmatpush1.bf16.msra.mxu1 %v3187_v19  ;;  %v3253_v18 = vld [vmem:[#allocation8 + $0x3e8] ss:$16 sps:$4 sm:$0xff]   ;;  %v3258_v19 = vld [vmem:[#allocation8 + $0x404] ss:$16 sps:$4 sm:$0xff]   ;;  %v412_v3 = vpack.c.bf16 %v404_v50, %v404_v50  ;;  %v3339_v50 = vld [vmem:[#allocation8 + $0x5ac] ss:$16 sps:$4 sm:$0xff]  }
 0x155   :  { %2024 = vmatprep.subr.bf16.mxu0 %v3192_v20  ;;  %2188 = vmatprep.subr.bf16.mxu1 %v3195_v21  ;;  %v3261_v20 = vld [vmem:[#allocation8 + $0x40c] ss:$16 sps:$4 sm:$0xff]   ;;  %v409_v21 = vpack.c.bf16 %v401_v16, %v401_v16 }
 0x156   :  { %v3333_v16 = vld [vmem:[#allocation8 + $0x58c] ss:$16 sps:$4 sm:$0xff]  }
 0x158   :  { %2025 = vmatpush1.bf16.msra.mxu0 %v3190_v22  ;;  %2189 = vmatpush1.bf16.msra.mxu1 %v3193_v23  ;;  %v3256_v22 = vld [vmem:[#allocation8 + $0x400] ss:$16 sps:$4 sm:$0xff]   ;;  %v3259_v23 = vld [vmem:[#allocation8 + $0x408] ss:$16 sps:$4 sm:$0xff]  }
 0x159   :  { %2026 = vmatprep.subr.bf16.mxu0 %v3198_v25  ;;  %2190 = vmatprep.subr.bf16.mxu1 %v3201_v26  ;;  %v3264_v25 = vld [vmem:[#allocation8 + $0x424] ss:$16 sps:$4 sm:$0xff]   ;;  %v3267_v26 = vld [vmem:[#allocation8 + $0x42c] ss:$16 sps:$4 sm:$0xff]  }
 0x15c   :  { %2027 = vmatpush1.bf16.msra.mxu0 %v3196_v30  ;;  %2191 = vmatpush1.bf16.msra.mxu1 %v3199_v31  ;;  %v3270_v30 = vld [vmem:[#allocation8 + $0x444] ss:$16 sps:$4 sm:$0xff]   ;;  %v3273_v31 = vld [vmem:[#allocation8 + $0x44c] ss:$16 sps:$4 sm:$0xff]  }
 0x15d   :  { %2028 = vmatprep.subr.bf16.mxu0 %v3204_v32  ;;  %2192 = vmatprep.subr.bf16.mxu1 %v3207_v33  ;;  %v3268_v32 = vld [vmem:[#allocation8 + $0x440] ss:$16 sps:$4 sm:$0xff]   ;;  %v3271_v33 = vld [vmem:[#allocation8 + $0x448] ss:$16 sps:$4 sm:$0xff]  }
 0x160   :  { %2029 = vmatpush1.bf16.msra.mxu0 %v3202_v34  ;;  %2193 = vmatpush1.bf16.msra.mxu1 %v3205_v35  ;;  %v3276_v34 = vld [vmem:[#allocation8 + $0x464] ss:$16 sps:$4 sm:$0xff]   ;;  %v3279_v35 = vld [vmem:[#allocation8 + $0x46c] ss:$16 sps:$4 sm:$0xff]  }
 0x161   :  { %2030 = vmatprep.subr.bf16.mxu0 %v3210_v36  ;;  %2194 = vmatprep.subr.bf16.mxu1 %v3213_v42  ;;  %v3274_v36 = vld [vmem:[#allocation8 + $0x460] ss:$16 sps:$4 sm:$0xff]   ;;  %v3277_v42 = vld [vmem:[#allocation8 + $0x468] ss:$16 sps:$4 sm:$0xff]  }
 0x164   :  { %2031 = vmatpush1.bf16.msra.mxu0 %v3208_v43  ;;  %2195 = vmatpush1.bf16.msra.mxu1 %v3211_v44  ;;  %v3282_v43 = vld [vmem:[#allocation8 + $0x484] ss:$16 sps:$4 sm:$0xff]   ;;  %v3285_v44 = vld [vmem:[#allocation8 + $0x48c] ss:$16 sps:$4 sm:$0xff]  }
 0x165   :  { %2032 = vmatprep.subr.bf16.mxu0 %v3216_v45  ;;  %2196 = vmatprep.subr.bf16.mxu1 %v3219_v46  ;;  %v3280_v45 = vld [vmem:[#allocation8 + $0x480] ss:$16 sps:$4 sm:$0xff]   ;;  %v3283_v46 = vld [vmem:[#allocation8 + $0x488] ss:$16 sps:$4 sm:$0xff]  }
 0x168   :  { %2033 = vmatpush1.bf16.msra.mxu0 %v3214_v47  ;;  %2197 = vmatpush1.bf16.msra.mxu1 %v3217_v48  ;;  %v3288_v47 = vld [vmem:[#allocation8 + $0x4a4] ss:$16 sps:$4 sm:$0xff]   ;;  %v3291_v48 = vld [vmem:[#allocation8 + $0x4ac] ss:$16 sps:$4 sm:$0xff]  }
 0x169   :  { %2034 = vmatprep.subr.bf16.mxu0 %v3222_v49  ;;  %2198 = vmatprep.subr.bf16.mxu1 %v3225_v51  ;;  %v3286_v49 = vld [vmem:[#allocation8 + $0x4a0] ss:$16 sps:$4 sm:$0xff]   ;;  %v3289_v51 = vld [vmem:[#allocation8 + $0x4a8] ss:$16 sps:$4 sm:$0xff]  }
 0x16c   :  { %2035 = vmatpush1.bf16.msra.mxu0 %v3220_v52  ;;  %2199 = vmatpush1.bf16.msra.mxu1 %v3223_v53  ;;  %v3294_v52 = vld [vmem:[#allocation8 + $0x4c4] ss:$16 sps:$4 sm:$0xff]   ;;  %v3297_v53 = vld [vmem:[#allocation8 + $0x4cc] ss:$16 sps:$4 sm:$0xff]  }
 0x16d   :  { %2036 = vmatprep.subr.bf16.mxu0 %v3228_v54  ;;  %2200 = vmatprep.subr.bf16.mxu1 %v3231_v55  ;;  %v3292_v54 = vld [vmem:[#allocation8 + $0x4c0] ss:$16 sps:$4 sm:$0xff]   ;;  %v3295_v55 = vld [vmem:[#allocation8 + $0x4c8] ss:$16 sps:$4 sm:$0xff]  }
 0x170   :  { %2037 = vmatpush1.bf16.msra.mxu0 %v3226_v56  ;;  %2201 = vmatpush1.bf16.msra.mxu1 %v3229_v57  ;;  %v3300_v56 = vld [vmem:[#allocation8 + $0x4e4] ss:$16 sps:$4 sm:$0xff]   ;;  %v3303_v57 = vld [vmem:[#allocation8 + $0x4ec] ss:$16 sps:$4 sm:$0xff]  }
 0x171   :  { %2038 = vmatprep.subr.bf16.mxu0 %v3234_v58  ;;  %2202 = vmatprep.subr.bf16.mxu1 %v3237_v59  ;;  %v3298_v58 = vld [vmem:[#allocation8 + $0x4e0] ss:$16 sps:$4 sm:$0xff]   ;;  %v3301_v59 = vld [vmem:[#allocation8 + $0x4e8] ss:$16 sps:$4 sm:$0xff]  }
 0x174   :  { %2039 = vmatpush1.bf16.msra.mxu0 %v3232_v61  ;;  %2203 = vmatpush1.bf16.msra.mxu1 %v3235_v62  ;;  %v3306_v61 = vld [vmem:[#allocation8 + $0x504] ss:$16 sps:$4 sm:$0xff]   ;;  %v3309_v62 = vld [vmem:[#allocation8 + $0x50c] ss:$16 sps:$4 sm:$0xff]  }
 0x175   :  { %2040 = vmatprep.subr.bf16.mxu0 %v3240_v63  ;;  %2204 = vmatprep.subr.bf16.mxu1 %v3243_v0  ;;  %v3304_v63 = vld [vmem:[#allocation8 + $0x500] ss:$16 sps:$4 sm:$0xff]   ;;  %v3307_v0 = vld [vmem:[#allocation8 + $0x508] ss:$16 sps:$4 sm:$0xff]  }
 0x178   :  { %2041 = vmatpush1.bf16.msra.mxu0 %v3238_v5  ;;  %2205 = vmatpush1.bf16.msra.mxu1 %v3241_v6  ;;  %v3310_v5 = vld [vmem:[#allocation8 + $0x520] ss:$16 sps:$4 sm:$0xff]   ;;  %v3313_v6 = vld [vmem:[#allocation8 + $0x528] ss:$16 sps:$4 sm:$0xff]  }
 0x179   :  { %2042 = vmatprep.subr.bf16.mxu0 %v3246_v7  ;;  %2206 = vmatprep.subr.bf16.mxu1 %v3249_v8  ;;  %v3318_v7 = vld [vmem:[#allocation8 + $0x544] ss:$16 sps:$4 sm:$0xff]   ;;  %v3321_v8 = vld [vmem:[#allocation8 + $0x54c] ss:$16 sps:$4 sm:$0xff]  }
 0x17c   :  { %2043 = vmatpush1.bf16.msra.mxu0 %v3244_v11  ;;  %2207 = vmatpush1.bf16.msra.mxu1 %v3247_v12  ;;  %v3324_v11 = vld [vmem:[#allocation8 + $0x564] ss:$16 sps:$4 sm:$0xff]   ;;  %v3327_v12 = vld [vmem:[#allocation8 + $0x56c] ss:$16 sps:$4 sm:$0xff]  }
 0x17d   :  { %2044 = vmatprep.subr.bf16.mxu0 %v3252_v13  ;;  %2208 = vmatprep.subr.bf16.mxu1 %v3255_v14  ;;  %v3322_v13 = vld [vmem:[#allocation8 + $0x560] ss:$16 sps:$4 sm:$0xff]   ;;  %v3325_v14 = vld [vmem:[#allocation8 + $0x568] ss:$16 sps:$4 sm:$0xff]  }
 0x180   :  { %2045 = vmatpush1.bf16.msra.mxu0 %v3250_v17  ;;  %2209 = vmatpush1.bf16.msra.mxu1 %v3253_v18  ;;  %v129_v17 = vsub.s32 4, %v3737_v37  ;;  %v3328_v18 = vld [vmem:[#allocation8 + $0x580] ss:$16 sps:$4 sm:$0xff]  }
 0x181   :  { %2055 = vmatprep.subr.bf16.mxu0 %v3258_v19  ;;  %2219 = vmatprep.subr.bf16.mxu1 %v3261_v20  ;;  %v3331_v19 = vld [vmem:[#allocation8 + $0x588] ss:$16 sps:$4 sm:$0xff]   ;;  %v3336_v20 = vld [vmem:[#allocation8 + $0x5a4] ss:$16 sps:$4 sm:$0xff]  }
 0x183   :  { %2047 = vmatmul.mubr.bf16.vlgmr.msra.gmra.mrb[8].mxu0 %v409_v21  ;;  %2211 = vmatmul.mubr.bf16.vlgmr.msra.gmra.mrb[8].mxu1 %v409_v21  ;;  %v141_v21 = vsub.s32 7, %v3737_v37 }
 0x184   :  { %2056 = vmatpush1.bf16.msra.mxu0 %v3256_v22  ;;  %2220 = vmatpush1.bf16.msra.mxu1 %v3259_v23  ;;  %v130_v22 = vrot.slane %v3740_v39, %v129_v17  ;;  %v3334_v23 = vld [vmem:[#allocation8 + $0x5a0] ss:$16 sps:$4 sm:$0xff]   ;;  %v3405_v17 = vld [vmem:[#allocation8 + $0x70c] ss:$16 sps:$4 sm:$0xff]  }
 0x185   :  { %2057 = vmatprep.subr.bf16.mxu0 %v3264_v25  ;;  %2221 = vmatprep.subr.bf16.mxu1 %v3267_v26  ;;  %v3337_v25 = vld [vmem:[#allocation8 + $0x5a8] ss:$16 sps:$4 sm:$0xff]   ;;  %v3342_v26 = vld [vmem:[#allocation8 + $0x5c4] ss:$16 sps:$4 sm:$0xff]  }
 0x186   :  { %2087 = vmatprep.mubr.bf16.mxu0 %v412_v3  ;;  %2251 = vmatprep.mubr.bf16.mxu1 %v412_v3  ;;  %v3345_v3 = vld [vmem:[#allocation8 + $0x5cc] ss:$16 sps:$4 sm:$0xff]  }
 0x188   :  { %2058 = vmatpush1.bf16.msra.mxu0 %v3262_v28  ;;  %2222 = vmatpush1.bf16.msra.mxu1 %v3265_v29  ;;  %v142_v28 = vrot.slane %v3740_v39, %v141_v21  ;;  %v352_v29 = vadd.f32 %v3755_v2, %v130_v22  ;;  %v3406_v21 = vld [vmem:[#allocation8 + $0x720] ss:$16 sps:$4 sm:$0xff]   ;;  %v3409_v22 = vld [vmem:[#allocation8 + $0x728] ss:$16 sps:$4 sm:$0xff]  }
 0x189   :  { %2059 = vmatprep.subr.bf16.mxu0 %v3270_v30  ;;  %2223 = vmatprep.subr.bf16.mxu1 %v3273_v31  ;;  %v3340_v30 = vld [vmem:[#allocation8 + $0x5c0] ss:$16 sps:$4 sm:$0xff]   ;;  %v3343_v31 = vld [vmem:[#allocation8 + $0x5c8] ss:$16 sps:$4 sm:$0xff]  }
 0x18c   :  { %2060 = vmatpush1.bf16.msra.mxu0 %v3268_v32  ;;  %2224 = vmatpush1.bf16.msra.mxu1 %v3271_v33  ;;  %v3348_v32 = vld [vmem:[#allocation8 + $0x5e4] ss:$16 sps:$4 sm:$0xff]   ;;  %v3351_v33 = vld [vmem:[#allocation8 + $0x5ec] ss:$16 sps:$4 sm:$0xff]  }
 0x18d   :  { %2061 = vmatprep.subr.bf16.mxu0 %v3276_v34  ;;  %2225 = vmatprep.subr.bf16.mxu1 %v3279_v35  ;;  %v395_v34 = vadd.f32 %v3761_v27, %v142_v28  ;;  %v403_v35 = vmax.f32 %v352_v29, 0.0  ;;  %v3420_v28 = vld [vmem:[#allocation8 + $0x764] ss:$16 sps:$4 sm:$0xff]   ;;  %v3423_v29 = vld [vmem:[#allocation8 + $0x76c] ss:$16 sps:$4 sm:$0xff]  }
 0x18f   :  { %v406_v2 = vmax.f32 %v395_v34, 0.0  ;;  %v3424_v34 = vld [vmem:[#allocation8 + $0x780] ss:$16 sps:$4 sm:$0xff]  }
 0x190   :  { %2062 = vmatpush1.bf16.msra.mxu0 %v3274_v36  ;;  %2226 = vmatpush1.bf16.msra.mxu1 %v3277_v42  ;;  %v3346_v36 = vld [vmem:[#allocation8 + $0x5e0] ss:$16 sps:$4 sm:$0xff]   ;;  %v3349_v42 = vld [vmem:[#allocation8 + $0x5e8] ss:$16 sps:$4 sm:$0xff]  }
 0x191   :  { %2063 = vmatprep.subr.bf16.mxu0 %v3282_v43  ;;  %2227 = vmatprep.subr.bf16.mxu1 %v3285_v44  ;;  %v3354_v43 = vld [vmem:[#allocation8 + $0x604] ss:$16 sps:$4 sm:$0xff]   ;;  %v3357_v44 = vld [vmem:[#allocation8 + $0x60c] ss:$16 sps:$4 sm:$0xff]   ;;  %v414_v27 = vpack.c.bf16 %v406_v2, %v406_v2  ;;  %v3433_v2 = vld [vmem:[#allocation8 + $0x7a8] ss:$16 sps:$4 sm:$0xff]  }
 0x194   :  { %2064 = vmatpush1.bf16.msra.mxu0 %v3280_v45  ;;  %2228 = vmatpush1.bf16.msra.mxu1 %v3283_v46  ;;  %v411_v45 = vpack.c.bf16 %v403_v35, %v403_v35  ;;  %v3352_v46 = vld [vmem:[#allocation8 + $0x600] ss:$16 sps:$4 sm:$0xff]   ;;  %v3427_v35 = vld [vmem:[#allocation8 + $0x788] ss:$16 sps:$4 sm:$0xff]  }
 0x195   :  { %2065 = vmatprep.subr.bf16.mxu0 %v3288_v47  ;;  %2229 = vmatprep.subr.bf16.mxu1 %v3291_v48  ;;  %v3355_v47 = vld [vmem:[#allocation8 + $0x608] ss:$16 sps:$4 sm:$0xff]   ;;  %v3360_v48 = vld [vmem:[#allocation8 + $0x624] ss:$16 sps:$4 sm:$0xff]  }
 0x198   :  { %2066 = vmatpush1.bf16.msra.mxu0 %v3286_v49  ;;  %2230 = vmatpush1.bf16.msra.mxu1 %v3289_v51  ;;  %v3363_v49 = vld [vmem:[#allocation8 + $0x62c] ss:$16 sps:$4 sm:$0xff]   ;;  %v3358_v51 = vld [vmem:[#allocation8 + $0x620] ss:$16 sps:$4 sm:$0xff]  }
 0x199   :  { %2067 = vmatprep.subr.bf16.mxu0 %v3294_v52  ;;  %2231 = vmatprep.subr.bf16.mxu1 %v3297_v53  ;;  %v3361_v52 = vld [vmem:[#allocation8 + $0x628] ss:$16 sps:$4 sm:$0xff]   ;;  %v3366_v53 = vld [vmem:[#allocation8 + $0x644] ss:$16 sps:$4 sm:$0xff]  }
 0x19c   :  { %2068 = vmatpush1.bf16.msra.mxu0 %v3292_v54  ;;  %2232 = vmatpush1.bf16.msra.mxu1 %v3295_v55  ;;  %v3369_v54 = vld [vmem:[#allocation8 + $0x64c] ss:$16 sps:$4 sm:$0xff]   ;;  %v3364_v55 = vld [vmem:[#allocation8 + $0x640] ss:$16 sps:$4 sm:$0xff]  }
 0x19d   :  { %2069 = vmatprep.subr.bf16.mxu0 %v3300_v56  ;;  %2233 = vmatprep.subr.bf16.mxu1 %v3303_v57  ;;  %v3367_v56 = vld [vmem:[#allocation8 + $0x648] ss:$16 sps:$4 sm:$0xff]   ;;  %v3372_v57 = vld [vmem:[#allocation8 + $0x664] ss:$16 sps:$4 sm:$0xff]  }
 0x1a0   :  { %2070 = vmatpush1.bf16.msra.mxu0 %v3298_v58  ;;  %2234 = vmatpush1.bf16.msra.mxu1 %v3301_v59  ;;  %v3375_v58 = vld [vmem:[#allocation8 + $0x66c] ss:$16 sps:$4 sm:$0xff]   ;;  %v3370_v59 = vld [vmem:[#allocation8 + $0x660] ss:$16 sps:$4 sm:$0xff]  }
 0x1a1   :  { %2071 = vmatprep.subr.bf16.mxu0 %v3306_v61  ;;  %2235 = vmatprep.subr.bf16.mxu1 %v3309_v62  ;;  %v3373_v61 = vld [vmem:[#allocation8 + $0x668] ss:$16 sps:$4 sm:$0xff]   ;;  %v3378_v62 = vld [vmem:[#allocation8 + $0x684] ss:$16 sps:$4 sm:$0xff]  }
 0x1a4   :  { %2072 = vmatpush1.bf16.msra.mxu0 %v3304_v63  ;;  %2236 = vmatpush1.bf16.msra.mxu1 %v3307_v0  ;;  %v3381_v63 = vld [vmem:[#allocation8 + $0x68c] ss:$16 sps:$4 sm:$0xff]   ;;  %v3376_v0 = vld [vmem:[#allocation8 + $0x680] ss:$16 sps:$4 sm:$0xff]  }
 0x1a5   :  { %2073 = vmatprep.subr.bf16.mxu0 %v3312_v1  ;;  %2237 = vmatprep.subr.bf16.mxu1 %v3315_v4  ;;  %v3379_v1 = vld [vmem:[#allocation8 + $0x688] ss:$16 sps:$4 sm:$0xff]   ;;  %v3384_v4 = vld [vmem:[#allocation8 + $0x6a4] ss:$16 sps:$4 sm:$0xff]  }
 0x1a8   :  { %2074 = vmatpush1.bf16.msra.mxu0 %v3310_v5  ;;  %2238 = vmatpush1.bf16.msra.mxu1 %v3313_v6  ;;  %v3387_v5 = vld [vmem:[#allocation8 + $0x6ac] ss:$16 sps:$4 sm:$0xff]   ;;  %v3382_v6 = vld [vmem:[#allocation8 + $0x6a0] ss:$16 sps:$4 sm:$0xff]  }
 0x1a9   :  { %2075 = vmatprep.subr.bf16.mxu0 %v3318_v7  ;;  %2239 = vmatprep.subr.bf16.mxu1 %v3321_v8  ;;  %v3385_v7 = vld [vmem:[#allocation8 + $0x6a8] ss:$16 sps:$4 sm:$0xff]   ;;  %v3390_v8 = vld [vmem:[#allocation8 + $0x6c4] ss:$16 sps:$4 sm:$0xff]  }
 0x1ac   :  { %2076 = vmatpush1.bf16.msra.mxu0 %v3316_v9  ;;  %2240 = vmatpush1.bf16.msra.mxu1 %v3319_v10  ;;  %v3393_v9 = vld [vmem:[#allocation8 + $0x6cc] ss:$16 sps:$4 sm:$0xff]   ;;  %v3388_v10 = vld [vmem:[#allocation8 + $0x6c0] ss:$16 sps:$4 sm:$0xff]  }
 0x1ad   :  { %2077 = vmatprep.subr.bf16.mxu0 %v3324_v11  ;;  %2241 = vmatprep.subr.bf16.mxu1 %v3327_v12  ;;  %v3391_v11 = vld [vmem:[#allocation8 + $0x6c8] ss:$16 sps:$4 sm:$0xff]   ;;  %v3396_v12 = vld [vmem:[#allocation8 + $0x6e4] ss:$16 sps:$4 sm:$0xff]  }
 0x1b0   :  { %2078 = vmatpush1.bf16.msra.mxu0 %v3322_v13  ;;  %2242 = vmatpush1.bf16.msra.mxu1 %v3325_v14  ;;  %v3399_v13 = vld [vmem:[#allocation8 + $0x6ec] ss:$16 sps:$4 sm:$0xff]   ;;  %v3394_v14 = vld [vmem:[#allocation8 + $0x6e0] ss:$16 sps:$4 sm:$0xff]  }
 0x1b1   :  { %2079 = vmatprep.subr.bf16.mxu0 %v3330_v15  ;;  %2243 = vmatprep.subr.bf16.mxu1 %v3333_v16  ;;  %v3397_v15 = vld [vmem:[#allocation8 + $0x6e8] ss:$16 sps:$4 sm:$0xff]   ;;  %v3402_v16 = vld [vmem:[#allocation8 + $0x704] ss:$16 sps:$4 sm:$0xff]  }
 0x1b4   :  { %2080 = vmatpush1.bf16.msra.mxu0 %v3328_v18  ;;  %2244 = vmatpush1.bf16.msra.mxu1 %v3331_v19  ;;  %v3400_v18 = vld [vmem:[#allocation8 + $0x700] ss:$16 sps:$4 sm:$0xff]   ;;  %v3403_v19 = vld [vmem:[#allocation8 + $0x708] ss:$16 sps:$4 sm:$0xff]  }
 0x1b5   :  { %2081 = vmatprep.subr.bf16.mxu0 %v3336_v20  ;;  %2245 = vmatprep.subr.bf16.mxu1 %v3339_v50  ;;  %v3408_v20 = vld [vmem:[#allocation8 + $0x724] ss:$16 sps:$4 sm:$0xff]   ;;  %v3411_v50 = vld [vmem:[#allocation8 + $0x72c] ss:$16 sps:$4 sm:$0xff]  }
 0x1b8   :  { %2082 = vmatpush1.bf16.msra.mxu0 %v3334_v23  ;;  %2246 = vmatpush1.bf16.msra.mxu1 %v3337_v25  ;;  %v3414_v23 = vld [vmem:[#allocation8 + $0x744] ss:$16 sps:$4 sm:$0xff]   ;;  %v3417_v25 = vld [vmem:[#allocation8 + $0x74c] ss:$16 sps:$4 sm:$0xff]  }
 0x1b9   :  { %2083 = vmatprep.subr.bf16.mxu0 %v3342_v26  ;;  %2247 = vmatprep.subr.bf16.mxu1 %v3345_v3  ;;  %v3412_v26 = vld [vmem:[#allocation8 + $0x740] ss:$16 sps:$4 sm:$0xff]   ;;  %v3415_v3 = vld [vmem:[#allocation8 + $0x748] ss:$16 sps:$4 sm:$0xff]  }
 0x1bc   :  { %2084 = vmatpush1.bf16.msra.mxu0 %v3340_v30  ;;  %2248 = vmatpush1.bf16.msra.mxu1 %v3343_v31  ;;  %v3418_v30 = vld [vmem:[#allocation8 + $0x760] ss:$16 sps:$4 sm:$0xff]   ;;  %v3421_v31 = vld [vmem:[#allocation8 + $0x768] ss:$16 sps:$4 sm:$0xff]  }
 0x1bd   :  { %2085 = vmatprep.subr.bf16.mxu0 %v3348_v32  ;;  %2249 = vmatprep.subr.bf16.mxu1 %v3351_v33  ;;  %v3426_v32 = vld [vmem:[#allocation8 + $0x784] ss:$16 sps:$4 sm:$0xff]   ;;  %v3429_v33 = vld [vmem:[#allocation8 + $0x78c] ss:$16 sps:$4 sm:$0xff]  }
 0x1c0   :  { %2086 = vmatpush1.bf16.msra.mxu0 %v3346_v36  ;;  %2250 = vmatpush1.bf16.msra.mxu1 %v3349_v42  ;;  %v137_v36 = vsub.s32 6, %v3737_v37  ;;  %v3432_v42 = vld [vmem:[#allocation8 + $0x7a4] ss:$16 sps:$4 sm:$0xff]  }
 0x1c1   :  { %2096 = vmatprep.subr.bf16.mxu0 %v3354_v43  ;;  %2260 = vmatprep.subr.bf16.mxu1 %v3357_v44  ;;  %v3435_v43 = vld [vmem:[#allocation8 + $0x7ac] ss:$16 sps:$4 sm:$0xff]   ;;  %v3430_v44 = vld [vmem:[#allocation8 + $0x7a0] ss:$16 sps:$4 sm:$0xff]  }
 0x1c3   :  { %2088 = vmatmul.mubr.bf16.vlgmr.msra.gmra.mrb[8].mxu0 %v411_v45  ;;  %2252 = vmatmul.mubr.bf16.vlgmr.msra.gmra.mrb[8].mxu1 %v411_v45  ;;  %v138_v45 = vrot.slane %v3740_v39, %v137_v36  ;;  %v3448_v39 = vld [vmem:[#allocation10 + $0x40] sm:$0xff]  }
 0x1c4   :  { %2097 = vmatpush1.bf16.msra.mxu0 %v3352_v46  ;;  %2261 = vmatpush1.bf16.msra.mxu1 %v3355_v47  ;;  %v3438_v46 = vld [vmem:[#allocation8 + $0x7c4] ss:$16 sps:$4 sm:$0xff]   ;;  %v3441_v47 = vld [vmem:[#allocation8 + $0x7cc] ss:$16 sps:$4 sm:$0xff]  }
 0x1c5   :  { %2098 = vmatprep.subr.bf16.mxu0 %v3360_v48  ;;  %2262 = vmatprep.subr.bf16.mxu1 %v3363_v49  ;;  %v3436_v48 = vld [vmem:[#allocation8 + $0x7c0] ss:$16 sps:$4 sm:$0xff]   ;;  %v3439_v49 = vld [vmem:[#allocation8 + $0x7c8] ss:$16 sps:$4 sm:$0xff]  }
 0x1c6   :  { %2128 = vmatprep.mubr.bf16.mxu0 %v414_v27  ;;  %2292 = vmatprep.mubr.bf16.mxu1 %v414_v27  ;;  %v393_v27 = vadd.f32 %v3759_v24, %v138_v45  ;;  %v3452_v24 = vld [vmem:[#allocation10 + $0x48] sm:$0xff]  }
 0x1c8   :  { %2099 = vmatpush1.bf16.msra.mxu0 %v3358_v51  ;;  %2263 = vmatpush1.bf16.msra.mxu1 %v3361_v52  ;;  %v3444_v51 = vld [vmem:[#allocation8 + $0x7e4] ss:$16 sps:$4 sm:$0xff]   ;;  %v3447_v52 = vld [vmem:[#allocation8 + $0x7ec] ss:$16 sps:$4 sm:$0xff]  }
 0x1c9   :  { %2100 = vmatprep.subr.bf16.mxu0 %v3366_v53  ;;  %2264 = vmatprep.subr.bf16.mxu1 %v3369_v54  ;;  %v3442_v53 = vld [vmem:[#allocation8 + $0x7e0] ss:$16 sps:$4 sm:$0xff]   ;;  %v3445_v54 = vld [vmem:[#allocation8 + $0x7e8] ss:$16 sps:$4 sm:$0xff]  }
 0x1cc   :  { %2101 = vmatpush1.bf16.msra.mxu0 %v3364_v55  ;;  %2265 = vmatpush1.bf16.msra.mxu1 %v3367_v56  ;;  %v405_v55 = vmax.f32 %v393_v27, 0.0  ;;  %v3449_v56 = vld [vmem:[#allocation10 + $0xc0] sm:$0xff]  }
 0x1cd   :  { %2102 = vmatprep.subr.bf16.mxu0 %v3372_v57  ;;  %2266 = vmatprep.subr.bf16.mxu1 %v3375_v58  ;;  %v3450_v57 = vld [vmem:[#allocation10] sm:$0xff]  }
 0x1ce   :  { %v3451_v58 = vld [vmem:[#allocation10 + $0x80] sm:$0xff]  }
 0x1d0   :  { %2103 = vmatpush1.bf16.msra.mxu0 %v3370_v59  ;;  %2267 = vmatpush1.bf16.msra.mxu1 %v3373_v61  ;;  %v413_v59 = vpack.c.bf16 %v405_v55, %v405_v55  ;;  %v3453_v61 = vld [vmem:[#allocation10 + $0xc8] sm:$0xff]  }
 0x1d1   :  { %2104 = vmatprep.subr.bf16.mxu0 %v3378_v62  ;;  %2268 = vmatprep.subr.bf16.mxu1 %v3381_v63  ;;  %v3454_v62 = vld [vmem:[#allocation10 + $0x8] sm:$0xff]  }
 0x1d2   :  { %v3455_v63 = vld [vmem:[#allocation10 + $0x88] sm:$0xff]  }
 0x1d4   :  { %2105 = vmatpush1.bf16.msra.mxu0 %v3376_v0  ;;  %2269 = vmatpush1.bf16.msra.mxu1 %v3379_v1  ;;  %v3456_v0 = vld [vmem:[#allocation10 + $0x50] sm:$0xff]  }
 0x1d5   :  { %2106 = vmatprep.subr.bf16.mxu0 %v3384_v4  ;;  %2270 = vmatprep.subr.bf16.mxu1 %v3387_v5  ;;  %v3457_v1 = vld [vmem:[#allocation10 + $0xd0] sm:$0xff]  }
 0x1d6   :  { %v3458_v4 = vld [vmem:[#allocation10 + $0x10] sm:$0xff]  }
 0x1d7   :  { %v3459_v5 = vld [vmem:[#allocation10 + $0x90] sm:$0xff]  }
 0x1d8   :  { %2107 = vmatpush1.bf16.msra.mxu0 %v3382_v6  ;;  %2271 = vmatpush1.bf16.msra.mxu1 %v3385_v7  ;;  %v3460_v6 = vld [vmem:[#allocation10 + $0x58] sm:$0xff]  }
 0x1d9   :  { %2108 = vmatprep.subr.bf16.mxu0 %v3390_v8  ;;  %2272 = vmatprep.subr.bf16.mxu1 %v3393_v9  ;;  %v3461_v7 = vld [vmem:[#allocation10 + $0xd8] sm:$0xff]  }
 0x1da   :  { %v3462_v8 = vld [vmem:[#allocation10 + $0x18] sm:$0xff]  }
 0x1db   :  { %v3463_v9 = vld [vmem:[#allocation10 + $0x98] sm:$0xff]  }
 0x1dc   :  { %2109 = vmatpush1.bf16.msra.mxu0 %v3388_v10  ;;  %2273 = vmatpush1.bf16.msra.mxu1 %v3391_v11  ;;  %v3464_v10 = vld [vmem:[#allocation10 + $0x60] sm:$0xff]  }
 0x1dd   :  { %2110 = vmatprep.subr.bf16.mxu0 %v3396_v12  ;;  %2274 = vmatprep.subr.bf16.mxu1 %v3399_v13  ;;  %v3465_v11 = vld [vmem:[#allocation10 + $0xe0] sm:$0xff]  }
 0x1de   :  { %v3466_v12 = vld [vmem:[#allocation10 + $0x20] sm:$0xff]  }
 0x1df   :  { %v3467_v13 = vld [vmem:[#allocation10 + $0xa0] sm:$0xff]  }
 0x1e0   :  { %2111 = vmatpush1.bf16.msra.mxu0 %v3394_v14  ;;  %2275 = vmatpush1.bf16.msra.mxu1 %v3397_v15  ;;  %v3468_v14 = vld [vmem:[#allocation10 + $0x68] sm:$0xff]  }
 0x1e1   :  { %2112 = vmatprep.subr.bf16.mxu0 %v3402_v16  ;;  %2276 = vmatprep.subr.bf16.mxu1 %v3405_v17  ;;  %v3469_v15 = vld [vmem:[#allocation10 + $0xe8] sm:$0xff]  }
 0x1e2   :  { %v3470_v16 = vld [vmem:[#allocation10 + $0x28] sm:$0xff]  }
 0x1e3   :  { %v3471_v17 = vld [vmem:[#allocation10 + $0xa8] sm:$0xff]  }
 0x1e4   :  { %2113 = vmatpush1.bf16.msra.mxu0 %v3400_v18  ;;  %2277 = vmatpush1.bf16.msra.mxu1 %v3403_v19  ;;  %v3472_v18 = vld [vmem:[#allocation10 + $0x70] sm:$0xff]  }
 0x1e5   :  { %2114 = vmatprep.subr.bf16.mxu0 %v3408_v20  ;;  %2278 = vmatprep.subr.bf16.mxu1 %v3411_v50  ;;  %v3473_v19 = vld [vmem:[#allocation10 + $0xf0] sm:$0xff]  }
 0x1e6   :  { %v3474_v20 = vld [vmem:[#allocation10 + $0x30] sm:$0xff]  }
 0x1e7   :  { %v3475_v50 = vld [vmem:[#allocation10 + $0xb0] sm:$0xff]  }
 0x1e8   :  { %2115 = vmatpush1.bf16.msra.mxu0 %v3406_v21  ;;  %2279 = vmatpush1.bf16.msra.mxu1 %v3409_v22  ;;  %v3476_v21 = vld [vmem:[#allocation10 + $0x78] sm:$0xff]  }
 0x1e9   :  { %2116 = vmatprep.subr.bf16.mxu0 %v3414_v23  ;;  %2280 = vmatprep.subr.bf16.mxu1 %v3417_v25  ;;  %v3477_v22 = vld [vmem:[#allocation10 + $0xf8] sm:$0xff]  }
 0x1ea   :  { %v3478_v23 = vld [vmem:[#allocation10 + $0x38] sm:$0xff]  }
 0x1eb   :  { %v3479_v25 = vld [vmem:[#allocation10 + $0xb8] sm:$0xff]  }
 0x1ec   :  { %2117 = vmatpush1.bf16.msra.mxu0 %v3412_v26  ;;  %2281 = vmatpush1.bf16.msra.mxu1 %v3415_v3  ;;  %v671_v26 = vld [vmem:[%s3810_s4] sm:$0xf] }
 0x1ed   :  { %2118 = vmatprep.subr.bf16.mxu0 %v3420_v28  ;;  %2282 = vmatprep.subr.bf16.mxu1 %v3423_v29  ;;  %v676_v3 = vrot.slane %v671_v26, %v113_v38  ;;  %v684_v28 = vrot.slane %v671_v26, %v121_v60  ;;  %v680_v29 = vrot.slane %v671_v26, %v117_v40 }
 0x1f0   :  { %2119 = vmatpush1.bf16.msra.mxu0 %v3418_v30  ;;  %2283 = vmatpush1.bf16.msra.mxu1 %v3421_v31  ;;  %v688_v30 = vrot.slane %v671_v26, %v125_v41 }
 0x1f1   :  { %2120 = vmatprep.subr.bf16.mxu0 %v3426_v32  ;;  %2284 = vmatprep.subr.bf16.mxu1 %v3429_v33 }
 0x1f4   :  { %2121 = vmatpush1.bf16.msra.mxu0 %v3424_v34  ;;  %2285 = vmatpush1.bf16.msra.mxu1 %v3427_v35 }
 0x1f5   :  { %2122 = vmatprep.subr.bf16.mxu0 %v3432_v42  ;;  %2286 = vmatprep.subr.bf16.mxu1 %v3435_v43 }
 0x1f8   :  { %2123 = vmatpush1.bf16.msra.mxu0 %v3430_v44  ;;  %2287 = vmatpush1.bf16.msra.mxu1 %v3433_v2 }
 0x1f9   :  { %2124 = vmatprep.subr.bf16.mxu0 %v3438_v46  ;;  %2288 = vmatprep.subr.bf16.mxu1 %v3441_v47 }
 0x1fc   :  { %2125 = vmatpush1.bf16.msra.mxu0 %v3436_v48  ;;  %2289 = vmatpush1.bf16.msra.mxu1 %v3439_v49 }
 0x1fd   :  { %2126 = vmatprep.subr.bf16.mxu0 %v3444_v51  ;;  %2290 = vmatprep.subr.bf16.mxu1 %v3447_v52  ;;  %v2946_v52 = vld [vmem:[%s3812_s6] ss:$0 sm:$0xff] }
 0x200   :  { %2127 = vmatpush1.bf16.msra.mxu0 %v3442_v53  ;;  %2291 = vmatpush1.bf16.msra.mxu1 %v3445_v54 }
 0x201   :  { %2979 = vmatprep.subr.bf16.mxu0 %v3448_v39  ;;  %3001 = vmatprep.subr.bf16.mxu1 %v3449_v56 }
 0x203   :  { %2129 = vmatmul.mubr.bf16.vlgmr.msra.gmra.mrb[8].mxu0 %v413_v59  ;;  %2293 = vmatmul.mubr.bf16.vlgmr.msra.gmra.mrb[8].mxu1 %v413_v59 }
 0x204   :  { %2980 = vmatpush3.bf16.msra.mxu0 %v3450_v57  ;;  %3002 = vmatpush3.bf16.msra.mxu1 %v3451_v58 }
 0x205   :  { %2981 = vmatprep.subr.bf16.mxu0 %v3452_v24  ;;  %3003 = vmatprep.subr.bf16.mxu1 %v3453_v61 }
 0x208   :  { %2982 = vmatpush3.bf16.msra.mxu0 %v3454_v62  ;;  %3004 = vmatpush3.bf16.msra.mxu1 %v3455_v63 }
 0x209   :  { %2983 = vmatprep.subr.bf16.mxu0 %v3456_v0  ;;  %3005 = vmatprep.subr.bf16.mxu1 %v3457_v1 }
 0x20c   :  { %2984 = vmatpush3.bf16.msra.mxu0 %v3458_v4  ;;  %3006 = vmatpush3.bf16.msra.mxu1 %v3459_v5 }
 0x20d   :  { %2985 = vmatprep.subr.bf16.mxu0 %v3460_v6  ;;  %3007 = vmatprep.subr.bf16.mxu1 %v3461_v7 }
 0x210   :  { %2986 = vmatpush3.bf16.msra.mxu0 %v3462_v8  ;;  %3008 = vmatpush3.bf16.msra.mxu1 %v3463_v9 }
 0x211   :  { %2987 = vmatprep.subr.bf16.mxu0 %v3464_v10  ;;  %3009 = vmatprep.subr.bf16.mxu1 %v3465_v11 }
 0x214   :  { %2988 = vmatpush3.bf16.msra.mxu0 %v3466_v12  ;;  %3010 = vmatpush3.bf16.msra.mxu1 %v3467_v13 }
 0x215   :  { %2989 = vmatprep.subr.bf16.mxu0 %v3468_v14  ;;  %3011 = vmatprep.subr.bf16.mxu1 %v3469_v15 }
 0x218   :  { %2990 = vmatpush3.bf16.msra.mxu0 %v3470_v16  ;;  %3012 = vmatpush3.bf16.msra.mxu1 %v3471_v17 }
 0x219   :  { %2991 = vmatprep.subr.bf16.mxu0 %v3472_v18  ;;  %3013 = vmatprep.subr.bf16.mxu1 %v3473_v19 }
 0x21c   :  { %2992 = vmatpush3.bf16.msra.mxu0 %v3474_v20  ;;  %3014 = vmatpush3.bf16.msra.mxu1 %v3475_v50 }
 0x21d   :  { %2993 = vmatprep.subr.bf16.mxu0 %v3476_v21  ;;  %3015 = vmatprep.subr.bf16.mxu1 %v3477_v22 }
 0x220   :  { %2994 = vmatpush3.bf16.msra.mxu0 %v3478_v23  ;;  %3016 = vmatpush3.bf16.msra.mxu1 %v3479_v25 }
 0x2d6   :  { %v2130_v31 = vpop.f32.mrb[8].mxu0  ;;  %v2294_v32 = vpop.f32.mrb[8].mxu1 }
 0x2d7   :  { %v3023_v33 = vadd.f32 %v2130_v31, %v676_v3  ;;  %v3025_v34 = vadd.f32 %v2294_v32, %v684_v28  ;;  %v2132_v35 = vpop.f32.mrb[9].mxu0  ;;  %v2296_v36 = vpop.f32.mrb[9].mxu1 }
 0x2d8   :  { %v3024_v42 = vadd.f32 %v2132_v35, %v680_v29  ;;  %v3026_v43 = vadd.f32 %v2296_v36, %v688_v30  ;;  %v2134_v44 = vpop.f32.mrb[10].mxu0  ;;  %v2298_v2 = vpop.f32.mrb[10].mxu1 }
 0x2d9   :  { %v2301_v38 = vmax.f32 %v3023_v33, 0.0  ;;  %v2303_v45 = vmax.f32 %v3025_v34, 0.0  ;;  %v2135_v46 = vpop.f32.mrb[11].mxu0  ;;  %v2299_v60 = vpop.f32.mrb[11].mxu1 }
 0x2da   :  { %v2302_v47 = vmax.f32 %v3024_v42, 0.0  ;;  %v2304_v48 = vmax.f32 %v3026_v43, 0.0 }
 0x2db   :  { %v2305_v37 = vpack.c.bf16 %v2301_v38, %v2301_v38  ;;  %v2307_v41 = vpack.c.bf16 %v2303_v45, %v2303_v45 }
 0x2dc   :  { %v2306_v40 = vpack.c.bf16 %v2302_v47, %v2302_v47  ;;  %v2308_v49 = vpack.c.bf16 %v2304_v48, %v2304_v48 }
 0x2de   :  { %2604 = vmatprep.mubr.bf16.mxu0 %v2306_v40  ;;  %2644 = vmatprep.mubr.bf16.mxu1 %v2308_v49 }
 0x2df   :  { %2605 = vmatmul.mubr.bf16.vlgmr.msra.gmra.mrb[12].mxu0 %v2305_v37  ;;  %2645 = vmatmul.mubr.bf16.vlgmr.msra.gmra.mrb[12].mxu1 %v2307_v41 }
 0x3b2   :  { %v2995_v27 = vpop.f32.mrb[12].mxu0  ;;  %v3017_v51 = vpop.f32.mrb[12].mxu1 }
 0x3b3   :  { %v2996_v53 = vpop.f32.mrb[13].mxu0  ;;  %v3018_v54 = vpop.f32.mrb[13].mxu1 }
 0x3b4   :  { %v2997_v55 = vadd.f32 %v2996_v53, %v2995_v27  ;;  %v3019_v39 = vadd.f32 %v3018_v54, %v3017_v51  ;;  %v2998_v56 = vpop.f32.mrb[14].mxu0  ;;  %v3020_v57 = vpop.f32.mrb[14].mxu1 }
 0x3b5   :  { %v2999_v58 = vpop.f32.mrb[15].mxu0  ;;  %v3021_v59 = vpop.f32.mrb[15].mxu1 }
 0x3b6   :  { %v2607_v24 = vadd.f32 %v2997_v55, %v2946_v52 }
 0x3b8   :  { %v2647_v61 = vadd.f32 %v3019_v39, %v2607_v24 }
 0x3ba   :  { %2652 = vst [vmem:[#allocation11] sm:$0xff] %v2647_v61 }
 0x3bb   :  { %3601 = shalt.err (!%p3598_p2)
}
 0x3bc   :  { %s3602_s21 = scalar_lea.hbm %s3813_s7, 128 }
 0x3bd   :  { %p3603_p3 = scmp.ne.s32.totalorder %s3813_s7, %s3602_s21  ;;  %p3606_p4 = scmp.lt.u32.totalorder %s3602_s21, %s3813_s7 }
 0x3bf   :  { %p3608_p5 = pnand %p3606_p4, %p3603_p3 }
 0x3c1   :  { %3611 = shalt.err (!%p3608_p5)
}
 0x3c2   :  { %2662 = dma.vmem_to_hbm [thread:$0]  %s2660_s18, 128, %s3813_s7, [#allocation4]  }
 0x3c3   :  { %3618 = dma.done.wait [#allocation4], 128  }
 0x3c4   :  { %3619 = vsyncadd [#allocation4], 4294967168 }
 0x3c5   :  { %2666 = vsyncpa [#allocation3], 1 }
 0x3c6   :  { %2667 = vsyncpa [#allocation6], 1 }
 0x3c7   :  { %2668 = vsyncpa [#allocation9], 1 }
 0x3c8   :  { %2669 = vsyncpa [#allocation4], 1 }

</bundles_post_ra>
